<compile_context>
chip_gen: v6e
topology: v6e:2x2x1
jax: 0.10.0
libtpu: 0.0.40
codegen_flags: <defaults>
</compile_context>

<pallas_src>
import functools

import jax
import jax.numpy as jnp
from jax.experimental import pallas as pl
from jax.experimental.pallas import tpu as pltpu

EPS = 1e-5
C_PAD = 128      # all channel dims padded to one full 128-lane vreg width
IN_PAD = 8       # raw input features (pos 3 + norm 3 = 6) padded to 8 lanes
N_LAYERS = 4

# Row layout of the packed small-parameter array [16, 128]:
_ROW_BN0_G = 0
_ROW_BN0_B = 1
_ROW_BIAS = 2                       # rows 2..5   : layer biases
_ROW_GAMMA = 2 + N_LAYERS           # rows 6..9   : layer gammas
_ROW_BETA = 2 + 2 * N_LAYERS        # rows 10..13 : layer betas
_P_ROWS = 16                        # padded to 16 sublanes


def _round_up(x, m):
    return (x + m - 1) // m * m


# ---------------------------------------------------------------------------
# Fused Pallas kernel: bn0 -> 4 x (GCNConv -> ReLU -> BN) -> mean-pool epilogue
# ---------------------------------------------------------------------------
def fused_mesh_gnn_kernel(a_ref, x0_ref, pool_ref, p_ref, w_ref, out_ref, x_scr):
    n = a_ref.shape[0]
    inv_n = 1.0 / n
    # Hoisted once (JAX does not CSE broadcast_in_dim); 8 sublanes -> well-formed MXU tile.
    ones8 = jnp.ones((8, n), jnp.float32)

    def batchnorm(h, gamma, beta):
        # Training-mode batch statistics (matches nn.BatchNorm1d default forward).
        # Single independent stat matmul: sum and sum-of-squares in one 256-lane push.
        stats = jnp.dot(ones8, jnp.concatenate([h, h * h], axis=-1),
                        preferred_element_type=jnp.float32)
        mean = stats[0:1, :C_PAD] * inv_n
        ex2 = stats[0:1, C_PAD:] * inv_n
        var = jnp.maximum(ex2 - mean * mean, 0.0)       # guard tiny negatives
        scale = gamma * jax.lax.rsqrt(var + EPS)
        shift = beta - mean * scale
        return h * scale + shift                        # folded affine: 1 mul + 1 add

    # bn0 on the raw input features.  Zero the resident scratch, masked-store the 8
    # real input columns; padded gamma lanes are 0 so pad channels stay exactly 0.
    x_scr[...] = jnp.zeros_like(x_scr)
    x_scr[:, 0:IN_PAD] = x0_ref[...]
    x_scr[...] = batchnorm(x_scr[...],
                           p_ref[_ROW_BN0_G:_ROW_BN0_G + 1, :],
                           p_ref[_ROW_BN0_B:_ROW_BN0_B + 1, :])

    a = a_ref[...]                                      # [N, N] bf16, read exactly once

    for l in range(N_LAYERS):                           # Python-unrolled layer loop
        # GCNConv: (x @ W) first (bf16 operands, f32 accumulate, shrinks to 128 lanes),
        # then the dense A_hat aggregation, bias, ReLU, BN.
        xw = jnp.dot(x_scr[...].astype(jnp.bfloat16), w_ref[l],
                     preferred_element_type=jnp.float32)
        h = jnp.dot(a, xw.astype(jnp.bfloat16),
                    preferred_element_type=jnp.float32)
        h = h + p_ref[_ROW_BIAS + l:_ROW_BIAS + l + 1, :]
        h = jnp.maximum(h, 0.0)                         # ReLU (pad channels stay 0)
        x_scr[...] = batchnorm(h,
                               p_ref[_ROW_GAMMA + l:_ROW_GAMMA + l + 1, :],
                               p_ref[_ROW_BETA + l:_ROW_BETA + l + 1, :])

    # global_mean_pool epilogue: pool rows are already scaled by 1/count.
    out_ref[...] = jnp.dot(pool_ref[...], x_scr[...].astype(jnp.bfloat16),
                           preferred_element_type=jnp.float32)


def _vmem():
    return pl.BlockSpec(memory_space=pltpu.MemorySpace.VMEM)


def _vmem_limit_bytes(n, b_pad):
    """Actual VMEM need (inputs + resident scratch + live intermediates) with slack
    for Mosaic internal scratch; capped below v7x's 64 MiB physical VMEM."""
    need = (2 * n * n                        # a_hat bf16
            + n * IN_PAD * 4                 # raw input features
            + b_pad * n * 2                  # pool matrix bf16
            + _P_ROWS * C_PAD * 4            # packed small params
            + N_LAYERS * C_PAD * C_PAD * 2   # bf16 weights
            + n * C_PAD * 4                  # resident activation scratch
            + 8 * n * C_PAD * 4              # live intermediates (xw, h, h*h, concat)
            + b_pad * C_PAD * 4)             # output
    need = int(need * 1.5) + (2 << 20)
    return int(min(max(need, 4 << 20), 48 << 20))


def fused_forward(a_hat, x0, pool_mat, p_packed, w_packed, *, n, b_pad):
    flops = (N_LAYERS * (2 * n * C_PAD * C_PAD + 2 * n * n * C_PAD)   # layer matmuls
             + (N_LAYERS + 1) * 2 * 8 * n * 2 * C_PAD                 # BN stat matmuls
             + 2 * b_pad * n * C_PAD)                                 # pooling epilogue
    bytes_accessed = int(a_hat.size * 2 + x0.size * 4 + pool_mat.size * 2
                         + p_packed.size * 4 + w_packed.size * 2
                         + b_pad * C_PAD * 4)

    return pl.pallas_call(
        fused_mesh_gnn_kernel,
        out_shape=jax.ShapeDtypeStruct((b_pad, C_PAD), jnp.float32),
        in_specs=[_vmem()] * 5,
        out_specs=_vmem(),
        scratch_shapes=[pltpu.VMEM((n, C_PAD), jnp.float32)],   # resident activations
        compiler_params=pltpu.CompilerParams(
            vmem_limit_bytes=_vmem_limit_bytes(n, b_pad)),
        cost_estimate=pl.CostEstimate(flops=int(flops),
                                      transcendentals=(N_LAYERS + 1) * C_PAD,
                                      bytes_accessed=bytes_accessed),
    )(a_hat, x0, pool_mat, p_packed, w_packed)


# ---------------------------------------------------------------------------
# Plain-JAX glue: dense normalized adjacency (PyG gcn_norm semantics) and the
# pooling matrix.  Built once per forward.
# ---------------------------------------------------------------------------
def build_a_hat(edge_index, num_nodes):
    """D^-1/2 (A + I) D^-1/2 matching PyG gcn_norm: duplicate edges are summed,
    existing self loops are replaced by the unit self loop added by
    add_remaining_self_loops."""
    src, dst = edge_index[0], edge_index[1]
    w = (src != dst).astype(jnp.float32)              # drop pre-existing self loops
    a = jnp.zeros((num_nodes, num_nodes), jnp.float32)
    a = a.at[dst, src].add(w)                         # A[i, j]: edge j -> i (dupes summed)
    a = a + jnp.eye(num_nodes, dtype=jnp.float32)     # exactly one unit self loop per node
    deg = jnp.sum(a, axis=1)                          # >= 1 thanks to self loops
    dinv = jax.lax.rsqrt(deg)
    return (a * dinv[:, None] * dinv[None, :]).astype(jnp.bfloat16)


def build_pool_matrix(batch, b_pad):
    onehot = (batch[None, :] == jnp.arange(b_pad)[:, None]).astype(jnp.float32)
    counts = jnp.maximum(jnp.sum(onehot, axis=1, keepdims=True), 1.0)
    return (onehot / counts).astype(jnp.bfloat16)     # true rows sum to 1, pad rows are 0


# ---------------------------------------------------------------------------
# Parameters (PyTorch-style init) + zero-padding / packing for the kernel
# ---------------------------------------------------------------------------
def init_params(key, in_channels, hidden):
    ks = jax.random.split(key, N_LAYERS)

    def glorot(k, fan_in, fan_out):
        lim = (6.0 / (fan_in + fan_out)) ** 0.5
        return jax.random.uniform(k, (fan_in, fan_out), jnp.float32, -lim, lim)

    dims = [in_channels] + [hidden] * N_LAYERS
    params = {"bn0_g": jnp.ones((in_channels,), jnp.float32),
              "bn0_b": jnp.zeros((in_channels,), jnp.float32)}
    for i in range(N_LAYERS):
        params[f"w{i}"] = glorot(ks[i], dims[i], dims[i + 1])
        params[f"b{i}"] = jnp.zeros((dims[i + 1],), jnp.float32)
        params[f"g{i}"] = jnp.ones((dims[i + 1],), jnp.float32)
        params[f"beta{i}"] = jnp.zeros((dims[i + 1],), jnp.float32)
    return params


def pack_params(params, in_channels, hidden):
    """Pack all small vectors into one [16, C_PAD] f32 array (padded gamma = 0 so pad
    channels stay 0) and all weights into one bf16 [4, C_PAD, C_PAD] array."""
    p = jnp.zeros((_P_ROWS, C_PAD), jnp.float32)
    p = p.at[_ROW_BN0_G, :in_channels].set(params["bn0_g"])
    p = p.at[_ROW_BN0_B, :in_channels].set(params["bn0_b"])
    w = jnp.zeros((N_LAYERS, C_PAD, C_PAD), jnp.float32)
    for i in range(N_LAYERS):
        wi = params[f"w{i}"]
        w = w.at[i, :wi.shape[0], :wi.shape[1]].set(wi)
        p = p.at[_ROW_BIAS + i, :hidden].set(params[f"b{i}"])
        p = p.at[_ROW_GAMMA + i, :hidden].set(params[f"g{i}"])
        p = p.at[_ROW_BETA + i, :hidden].set(params[f"beta{i}"])
    return p, w.astype(jnp.bfloat16)


# ---------------------------------------------------------------------------
# Full forward pass
# ---------------------------------------------------------------------------
def mesh_gnn_forward(params, pos, norm, edge_index, batch, *,
                     num_graphs, in_channels, hidden):
    x = jnp.concatenate([pos, norm], axis=1)          # data.x is None
    n = x.shape[0]
    b_pad = _round_up(max(num_graphs, 1), 8)

    x0 = jnp.pad(x, ((0, 0), (0, IN_PAD - x.shape[1])))   # [N, 8] f32 (tiny DMA)
    a_hat = build_a_hat(edge_index, n)
    pool_mat = build_pool_matrix(batch, b_pad)
    p_packed, w_packed = pack_params(params, in_channels, hidden)

    out = fused_forward(a_hat, x0, pool_mat, p_packed, w_packed, n=n, b_pad=b_pad)
    return out[:num_graphs, :hidden]


if __name__ == "__main__":
    N = 128           # total mesh vertices across the mini-batch
    E = 512           # directed edges (made symmetric below)
    HIDDEN = 32
    NUM_GRAPHS = 2
    IN_CHANNELS = 6   # pos (3) + norm (3); data.x is None

    key = jax.random.PRNGKey(0)
    k_pos, k_nrm, k_edge, k_par = jax.random.split(key, 4)

    pos = jax.random.normal(k_pos, (N, 3), jnp.float32)
    nrm = jax.random.normal(k_nrm, (N, 3), jnp.float32)

    e = jax.random.randint(k_edge, (2, E), 0, N, jnp.int32)
    edge_index = jnp.concatenate([e, e[::-1]], axis=1)    # undirected mesh edges

    batch = jnp.concatenate([jnp.zeros((N // 2,), jnp.int32),
                             jnp.ones((N - N // 2,), jnp.int32)])

    params = init_params(k_par, IN_CHANNELS, HIDDEN)

    fwd = jax.jit(functools.partial(mesh_gnn_forward, num_graphs=NUM_GRAPHS,
                                    in_channels=IN_CHANNELS, hidden=HIDDEN))
    out = fwd(params, pos, nrm, edge_index, batch)
    out = jax.block_until_ready(out)

    assert out.shape == (NUM_GRAPHS, HIDDEN)
    assert bool(jnp.all(jnp.isfinite(out)))
    print("KERNEL_OK")
</pallas_src>

<mosaic_0001>
module attributes {stable_mosaic.version = 11 : i64} {
  func.func private @main(%arg0: i32) attributes {dimension_semantics = [#tpu.dimension_semantics<core_parallel>], iteration_bounds = array<i64: 2>, tpu.core_type = #tpu.core_type<sc_scalar_subcore>, window_params = []} {
    return
  }
}

module attributes {stable_mosaic.version = 11 : i64} {
  func.func private @main(%arg0: i32) attributes {dimension_semantics = [#tpu.dimension_semantics<core_parallel>], iteration_bounds = array<i64: 2>, tpu.core_type = #tpu.core_type<sc_scalar_subcore>, window_params = []} {
    return
  }
}

module attributes {stable_mosaic.version = 11 : i64} {
  func.func @fused_mesh_gnn_kernel(%arg0: memref<128x128xbf16, #tpu.memory_space<vmem>>, %arg1: memref<128x8xf32, #tpu.memory_space<vmem>>, %arg2: memref<8x128xbf16, #tpu.memory_space<vmem>>, %arg3: memref<16x128xf32, #tpu.memory_space<vmem>>, %arg4: memref<4x128x128xbf16, #tpu.memory_space<vmem>>, %arg5: memref<8x128xf32, #tpu.memory_space<vmem>>, %arg6: memref<128x128xf32, #tpu.memory_space<vmem>>) attributes {dimension_semantics = [], scalar_prefetch = 0 : i64, scratch_operands = 1 : i64, tpu.core_type = #tpu.core_type<tc>} {
    %cst = arith.constant 1.000000e+00 : f32
    %0 = vector.broadcast %cst : f32 to vector<8x128xf32>
    %cst_0 = arith.constant 0.000000e+00 : f32
    %1 = vector.broadcast %cst_0 : f32 to vector<128x128xf32>
    %c0 = arith.constant 0 : index
    %c0_1 = arith.constant 0 : index
    %2 = vector.load %arg6[%c0, %c0_1] : memref<128x128xf32, #tpu.memory_space<vmem>>, vector<128x128xf32>
    tpu.vector_store %arg6[%c0, %c0_1], %1 {strides = array<i32>} : memref<128x128xf32, #tpu.memory_space<vmem>>, vector<128x128xf32>,
    %c0_2 = arith.constant 0 : index
    %c0_3 = arith.constant 0 : index
    %3 = vector.load %arg1[%c0_2, %c0_3] : memref<128x8xf32, #tpu.memory_space<vmem>>, vector<128x8xf32>
    %c0_4 = arith.constant 0 : index
    %c0_5 = arith.constant 0 : index
    %4 = vector.load %arg6[%c0_4, %c0_5] : memref<128x128xf32, #tpu.memory_space<vmem>>, vector<128x8xf32>
    tpu.vector_store %arg6[%c0_4, %c0_5], %3 {strides = array<i32>} : memref<128x128xf32, #tpu.memory_space<vmem>>, vector<128x8xf32>,
    %c0_6 = arith.constant 0 : index
    %c0_7 = arith.constant 0 : index
    %5 = vector.load %arg6[%c0_6, %c0_7] : memref<128x128xf32, #tpu.memory_space<vmem>>, vector<128x128xf32>
    %c0_8 = arith.constant 0 : index
    %c0_9 = arith.constant 0 : index
    %6 = vector.load %arg3[%c0_8, %c0_9] : memref<16x128xf32, #tpu.memory_space<vmem>>, vector<1x128xf32>
    %c1 = arith.constant 1 : index
    %c0_10 = arith.constant 0 : index
    %7 = vector.load %arg3[%c1, %c0_10] : memref<16x128xf32, #tpu.memory_space<vmem>>, vector<1x128xf32>
    %8 = arith.mulf %5, %5 : vector<128x128xf32>
    %9 = tpu.concatenate %5, %8 in 1 : vector<128x128xf32>, vector<128x128xf32> -> vector<128x256xf32>
    %cst_11 = arith.constant dense<0.000000e+00> : vector<8x256xf32>
    %10 = tpu.matmul %0, %9, %cst_11 {dimension_numbers = #tpu.dot_dimension_numbers<[1], [0], [0], [1], [0, 0, 1, 1], [], []>} : vector<8x128xf32>, vector<128x256xf32>, vector<8x256xf32> -> vector<8x256xf32>
    %11 = vector.extract_strided_slice %10 {offsets = [0, 0], sizes = [1, 128], strides = [1, 1]} : vector<8x256xf32> to vector<1x128xf32>
    %cst_12 = arith.constant 7.812500e-03 : f32
    %12 = vector.broadcast %cst_12 : f32 to vector<1x128xf32>
    %13 = arith.mulf %11, %12 : vector<1x128xf32>
    %14 = vector.extract_strided_slice %10 {offsets = [0, 128], sizes = [1, 128], strides = [1, 1]} : vector<8x256xf32> to vector<1x128xf32>
    %cst_13 = arith.constant 7.812500e-03 : f32
    %15 = vector.broadcast %cst_13 : f32 to vector<1x128xf32>
    %16 = arith.mulf %14, %15 : vector<1x128xf32>
    %17 = arith.mulf %13, %13 : vector<1x128xf32>
    %18 = arith.subf %16, %17 : vector<1x128xf32>
    %cst_14 = arith.constant 0.000000e+00 : f32
    %19 = vector.broadcast %cst_14 : f32 to vector<1x128xf32>
    %20 = arith.maximumf %18, %19 : vector<1x128xf32>
    %cst_15 = arith.constant 9.99999974E-6 : f32
    %21 = vector.broadcast %cst_15 : f32 to vector<1x128xf32>
    %22 = arith.addf %20, %21 : vector<1x128xf32>
    %23 = math.rsqrt %22 : vector<1x128xf32>
    %24 = arith.mulf %6, %23 : vector<1x128xf32>
    %25 = arith.mulf %13, %24 : vector<1x128xf32>
    %26 = arith.subf %7, %25 : vector<1x128xf32>
    %27 = vector.broadcast %24 : vector<1x128xf32> to vector<128x128xf32>
    %28 = arith.mulf %5, %27 : vector<128x128xf32>
    %29 = vector.broadcast %26 : vector<1x128xf32> to vector<128x128xf32>
    %30 = arith.addf %28, %29 : vector<128x128xf32>
    %c0_16 = arith.constant 0 : index
    %c0_17 = arith.constant 0 : index
    %31 = vector.load %arg6[%c0_16, %c0_17] : memref<128x128xf32, #tpu.memory_space<vmem>>, vector<128x128xf32>
    tpu.vector_store %arg6[%c0_16, %c0_17], %30 {strides = array<i32>} : memref<128x128xf32, #tpu.memory_space<vmem>>, vector<128x128xf32>,
    %c0_18 = arith.constant 0 : index
    %c0_19 = arith.constant 0 : index
    %32 = vector.load %arg0[%c0_18, %c0_19] : memref<128x128xbf16, #tpu.memory_space<vmem>>, vector<128x128xbf16>
    %c0_20 = arith.constant 0 : index
    %c0_21 = arith.constant 0 : index
    %33 = vector.load %arg6[%c0_20, %c0_21] : memref<128x128xf32, #tpu.memory_space<vmem>>, vector<128x128xf32>
    %34 = arith.truncf %33 : vector<128x128xf32> to vector<128x128xbf16>
    %c0_22 = arith.constant 0 : index
    %c0_23 = arith.constant 0 : index
    %c0_24 = arith.constant 0 : index
    %35 = vector.load %arg4[%c0_22, %c0_23, %c0_24] : memref<4x128x128xbf16, #tpu.memory_space<vmem>>, vector<1x128x128xbf16>
    %36 = vector.shape_cast %35 : vector<1x128x128xbf16> to vector<128x128xbf16>
    %cst_25 = arith.constant dense<0.000000e+00> : vector<128x128xf32>
    %37 = tpu.matmul %34, %36, %cst_25 {dimension_numbers = #tpu.dot_dimension_numbers<[1], [0], [0], [1], [0, 0, 1, 1], [], []>} : vector<128x128xbf16>, vector<128x128xbf16>, vector<128x128xf32> -> vector<128x128xf32>
    %38 = arith.truncf %37 : vector<128x128xf32> to vector<128x128xbf16>
    %cst_26 = arith.constant dense<0.000000e+00> : vector<128x128xf32>
    %39 = tpu.matmul %32, %38, %cst_26 {dimension_numbers = #tpu.dot_dimension_numbers<[1], [0], [0], [1], [0, 0, 1, 1], [], []>} : vector<128x128xbf16>, vector<128x128xbf16>, vector<128x128xf32> -> vector<128x128xf32>
    %c2 = arith.constant 2 : index
    %c0_27 = arith.constant 0 : index
    %40 = vector.load %arg3[%c2, %c0_27] : memref<16x128xf32, #tpu.memory_space<vmem>>, vector<1x128xf32>
    %41 = vector.broadcast %40 : vector<1x128xf32> to vector<128x128xf32>
    %42 = arith.addf %39, %41 : vector<128x128xf32>
    %cst_28 = arith.constant 0.000000e+00 : f32
    %43 = vector.broadcast %cst_28 : f32 to vector<128x128xf32>
    %44 = arith.maximumf %42, %43 : vector<128x128xf32>
    %c6 = arith.constant 6 : index
    %c0_29 = arith.constant 0 : index
    %45 = vector.load %arg3[%c6, %c0_29] : memref<16x128xf32, #tpu.memory_space<vmem>>, vector<1x128xf32>
    %c10 = arith.constant 10 : index
    %c0_30 = arith.constant 0 : index
    %46 = vector.load %arg3[%c10, %c0_30] : memref<16x128xf32, #tpu.memory_space<vmem>>, vector<1x128xf32>
    %47 = arith.mulf %44, %44 : vector<128x128xf32>
    %48 = tpu.concatenate %44, %47 in 1 : vector<128x128xf32>, vector<128x128xf32> -> vector<128x256xf32>
    %cst_31 = arith.constant dense<0.000000e+00> : vector<8x256xf32>
    %49 = tpu.matmul %0, %48, %cst_31 {dimension_numbers = #tpu.dot_dimension_numbers<[1], [0], [0], [1], [0, 0, 1, 1], [], []>} : vector<8x128xf32>, vector<128x256xf32>, vector<8x256xf32> -> vector<8x256xf32>
    %50 = vector.extract_strided_slice %49 {offsets = [0, 0], sizes = [1, 128], strides = [1, 1]} : vector<8x256xf32> to vector<1x128xf32>
    %cst_32 = arith.constant 7.812500e-03 : f32
    %51 = vector.broadcast %cst_32 : f32 to vector<1x128xf32>
    %52 = arith.mulf %50, %51 : vector<1x128xf32>
    %53 = vector.extract_strided_slice %49 {offsets = [0, 128], sizes = [1, 128], strides = [1, 1]} : vector<8x256xf32> to vector<1x128xf32>
    %cst_33 = arith.constant 7.812500e-03 : f32
    %54 = vector.broadcast %cst_33 : f32 to vector<1x128xf32>
    %55 = arith.mulf %53, %54 : vector<1x128xf32>
    %56 = arith.mulf %52, %52 : vector<1x128xf32>
    %57 = arith.subf %55, %56 : vector<1x128xf32>
    %cst_34 = arith.constant 0.000000e+00 : f32
    %58 = vector.broadcast %cst_34 : f32 to vector<1x128xf32>
    %59 = arith.maximumf %57, %58 : vector<1x128xf32>
    %cst_35 = arith.constant 9.99999974E-6 : f32
    %60 = vector.broadcast %cst_35 : f32 to vector<1x128xf32>
    %61 = arith.addf %59, %60 : vector<1x128xf32>
    %62 = math.rsqrt %61 : vector<1x128xf32>
    %63 = arith.mulf %45, %62 : vector<1x128xf32>
    %64 = arith.mulf %52, %63 : vector<1x128xf32>
    %65 = arith.subf %46, %64 : vector<1x128xf32>
    %66 = vector.broadcast %63 : vector<1x128xf32> to vector<128x128xf32>
    %67 = arith.mulf %44, %66 : vector<128x128xf32>
    %68 = vector.broadcast %65 : vector<1x128xf32> to vector<128x128xf32>
    %69 = arith.addf %67, %68 : vector<128x128xf32>
    %c0_36 = arith.constant 0 : index
    %c0_37 = arith.constant 0 : index
    %70 = vector.load %arg6[%c0_36, %c0_37] : memref<128x128xf32, #tpu.memory_space<vmem>>, vector<128x128xf32>
    tpu.vector_store %arg6[%c0_36, %c0_37], %69 {strides = array<i32>} : memref<128x128xf32, #tpu.memory_space<vmem>>, vector<128x128xf32>,
    %c0_38 = arith.constant 0 : index
    %c0_39 = arith.constant 0 : index
    %71 = vector.load %arg6[%c0_38, %c0_39] : memref<128x128xf32, #tpu.memory_space<vmem>>, vector<128x128xf32>
    %72 = arith.truncf %71 : vector<128x128xf32> to vector<128x128xbf16>
    %c1_40 = arith.constant 1 : index
    %c0_41 = arith.constant 0 : index
    %c0_42 = arith.constant 0 : index
    %73 = vector.load %arg4[%c1_40, %c0_41, %c0_42] : memref<4x128x128xbf16, #tpu.memory_space<vmem>>, vector<1x128x128xbf16>
    %74 = vector.shape_cast %73 : vector<1x128x128xbf16> to vector<128x128xbf16>
    %cst_43 = arith.constant dense<0.000000e+00> : vector<128x128xf32>
    %75 = tpu.matmul %72, %74, %cst_43 {dimension_numbers = #tpu.dot_dimension_numbers<[1], [0], [0], [1], [0, 0, 1, 1], [], []>} : vector<128x128xbf16>, vector<128x128xbf16>, vector<128x128xf32> -> vector<128x128xf32>
    %76 = arith.truncf %75 : vector<128x128xf32> to vector<128x128xbf16>
    %cst_44 = arith.constant dense<0.000000e+00> : vector<128x128xf32>
    %77 = tpu.matmul %32, %76, %cst_44 {dimension_numbers = #tpu.dot_dimension_numbers<[1], [0], [0], [1], [0, 0, 1, 1], [], []>} : vector<128x128xbf16>, vector<128x128xbf16>, vector<128x128xf32> -> vector<128x128xf32>
    %c3 = arith.constant 3 : index
    %c0_45 = arith.constant 0 : index
    %78 = vector.load %arg3[%c3, %c0_45] : memref<16x128xf32, #tpu.memory_space<vmem>>, vector<1x128xf32>
    %79 = vector.broadcast %78 : vector<1x128xf32> to vector<128x128xf32>
    %80 = arith.addf %77, %79 : vector<128x128xf32>
    %cst_46 = arith.constant 0.000000e+00 : f32
    %81 = vector.broadcast %cst_46 : f32 to vector<128x128xf32>
    %82 = arith.maximumf %80, %81 : vector<128x128xf32>
    %c7 = arith.constant 7 : index
    %c0_47 = arith.constant 0 : index
    %83 = vector.load %arg3[%c7, %c0_47] : memref<16x128xf32, #tpu.memory_space<vmem>>, vector<1x128xf32>
    %c11 = arith.constant 11 : index
    %c0_48 = arith.constant 0 : index
    %84 = vector.load %arg3[%c11, %c0_48] : memref<16x128xf32, #tpu.memory_space<vmem>>, vector<1x128xf32>
    %85 = arith.mulf %82, %82 : vector<128x128xf32>
    %86 = tpu.concatenate %82, %85 in 1 : vector<128x128xf32>, vector<128x128xf32> -> vector<128x256xf32>
    %cst_49 = arith.constant dense<0.000000e+00> : vector<8x256xf32>
    %87 = tpu.matmul %0, %86, %cst_49 {dimension_numbers = #tpu.dot_dimension_numbers<[1], [0], [0], [1], [0, 0, 1, 1], [], []>} : vector<8x128xf32>, vector<128x256xf32>, vector<8x256xf32> -> vector<8x256xf32>
    %88 = vector.extract_strided_slice %87 {offsets = [0, 0], sizes = [1, 128], strides = [1, 1]} : vector<8x256xf32> to vector<1x128xf32>
    %cst_50 = arith.constant 7.812500e-03 : f32
    %89 = vector.broadcast %cst_50 : f32 to vector<1x128xf32>
    %90 = arith.mulf %88, %89 : vector<1x128xf32>
    %91 = vector.extract_strided_slice %87 {offsets = [0, 128], sizes = [1, 128], strides = [1, 1]} : vector<8x256xf32> to vector<1x128xf32>
    %cst_51 = arith.constant 7.812500e-03 : f32
    %92 = vector.broadcast %cst_51 : f32 to vector<1x128xf32>
    %93 = arith.mulf %91, %92 : vector<1x128xf32>
    %94 = arith.mulf %90, %90 : vector<1x128xf32>
    %95 = arith.subf %93, %94 : vector<1x128xf32>
    %cst_52 = arith.constant 0.000000e+00 : f32
    %96 = vector.broadcast %cst_52 : f32 to vector<1x128xf32>
    %97 = arith.maximumf %95, %96 : vector<1x128xf32>
    %cst_53 = arith.constant 9.99999974E-6 : f32
    %98 = vector.broadcast %cst_53 : f32 to vector<1x128xf32>
    %99 = arith.addf %97, %98 : vector<1x128xf32>
    %100 = math.rsqrt %99 : vector<1x128xf32>
    %101 = arith.mulf %83, %100 : vector<1x128xf32>
    %102 = arith.mulf %90, %101 : vector<1x128xf32>
    %103 = arith.subf %84, %102 : vector<1x128xf32>
    %104 = vector.broadcast %101 : vector<1x128xf32> to vector<128x128xf32>
    %105 = arith.mulf %82, %104 : vector<128x128xf32>
    %106 = vector.broadcast %103 : vector<1x128xf32> to vector<128x128xf32>
    %107 = arith.addf %105, %106 : vector<128x128xf32>
    %c0_54 = arith.constant 0 : index
    %c0_55 = arith.constant 0 : index
    %108 = vector.load %arg6[%c0_54, %c0_55] : memref<128x128xf32, #tpu.memory_space<vmem>>, vector<128x128xf32>
    tpu.vector_store %arg6[%c0_54, %c0_55], %107 {strides = array<i32>} : memref<128x128xf32, #tpu.memory_space<vmem>>, vector<128x128xf32>,
    %c0_56 = arith.constant 0 : index
    %c0_57 = arith.constant 0 : index
    %109 = vector.load %arg6[%c0_56, %c0_57] : memref<128x128xf32, #tpu.memory_space<vmem>>, vector<128x128xf32>
    %110 = arith.truncf %109 : vector<128x128xf32> to vector<128x128xbf16>
    %c2_58 = arith.constant 2 : index
    %c0_59 = arith.constant 0 : index
    %c0_60 = arith.constant 0 : index
    %111 = vector.load %arg4[%c2_58, %c0_59, %c0_60] : memref<4x128x128xbf16, #tpu.memory_space<vmem>>, vector<1x128x128xbf16>
    %112 = vector.shape_cast %111 : vector<1x128x128xbf16> to vector<128x128xbf16>
    %cst_61 = arith.constant dense<0.000000e+00> : vector<128x128xf32>
    %113 = tpu.matmul %110, %112, %cst_61 {dimension_numbers = #tpu.dot_dimension_numbers<[1], [0], [0], [1], [0, 0, 1, 1], [], []>} : vector<128x128xbf16>, vector<128x128xbf16>, vector<128x128xf32> -> vector<128x128xf32>
    %114 = arith.truncf %113 : vector<128x128xf32> to vector<128x128xbf16>
    %cst_62 = arith.constant dense<0.000000e+00> : vector<128x128xf32>
    %115 = tpu.matmul %32, %114, %cst_62 {dimension_numbers = #tpu.dot_dimension_numbers<[1], [0], [0], [1], [0, 0, 1, 1], [], []>} : vector<128x128xbf16>, vector<128x128xbf16>, vector<128x128xf32> -> vector<128x128xf32>
    %c4 = arith.constant 4 : index
    %c0_63 = arith.constant 0 : index
    %116 = vector.load %arg3[%c4, %c0_63] : memref<16x128xf32, #tpu.memory_space<vmem>>, vector<1x128xf32>
    %117 = vector.broadcast %116 : vector<1x128xf32> to vector<128x128xf32>
    %118 = arith.addf %115, %117 : vector<128x128xf32>
    %cst_64 = arith.constant 0.000000e+00 : f32
    %119 = vector.broadcast %cst_64 : f32 to vector<128x128xf32>
    %120 = arith.maximumf %118, %119 : vector<128x128xf32>
    %c8 = arith.constant 8 : index
    %c0_65 = arith.constant 0 : index
    %121 = vector.load %arg3[%c8, %c0_65] : memref<16x128xf32, #tpu.memory_space<vmem>>, vector<1x128xf32>
    %c12 = arith.constant 12 : index
    %c0_66 = arith.constant 0 : index
    %122 = vector.load %arg3[%c12, %c0_66] : memref<16x128xf32, #tpu.memory_space<vmem>>, vector<1x128xf32>
    %123 = arith.mulf %120, %120 : vector<128x128xf32>
    %124 = tpu.concatenate %120, %123 in 1 : vector<128x128xf32>, vector<128x128xf32> -> vector<128x256xf32>
    %cst_67 = arith.constant dense<0.000000e+00> : vector<8x256xf32>
    %125 = tpu.matmul %0, %124, %cst_67 {dimension_numbers = #tpu.dot_dimension_numbers<[1], [0], [0], [1], [0, 0, 1, 1], [], []>} : vector<8x128xf32>, vector<128x256xf32>, vector<8x256xf32> -> vector<8x256xf32>
    %126 = vector.extract_strided_slice %125 {offsets = [0, 0], sizes = [1, 128], strides = [1, 1]} : vector<8x256xf32> to vector<1x128xf32>
    %cst_68 = arith.constant 7.812500e-03 : f32
    %127 = vector.broadcast %cst_68 : f32 to vector<1x128xf32>
    %128 = arith.mulf %126, %127 : vector<1x128xf32>
    %129 = vector.extract_strided_slice %125 {offsets = [0, 128], sizes = [1, 128], strides = [1, 1]} : vector<8x256xf32> to vector<1x128xf32>
    %cst_69 = arith.constant 7.812500e-03 : f32
    %130 = vector.broadcast %cst_69 : f32 to vector<1x128xf32>
    %131 = arith.mulf %129, %130 : vector<1x128xf32>
    %132 = arith.mulf %128, %128 : vector<1x128xf32>
    %133 = arith.subf %131, %132 : vector<1x128xf32>
    %cst_70 = arith.constant 0.000000e+00 : f32
    %134 = vector.broadcast %cst_70 : f32 to vector<1x128xf32>
    %135 = arith.maximumf %133, %134 : vector<1x128xf32>
    %cst_71 = arith.constant 9.99999974E-6 : f32
    %136 = vector.broadcast %cst_71 : f32 to vector<1x128xf32>
    %137 = arith.addf %135, %136 : vector<1x128xf32>
    %138 = math.rsqrt %137 : vector<1x128xf32>
    %139 = arith.mulf %121, %138 : vector<1x128xf32>
    %140 = arith.mulf %128, %139 : vector<1x128xf32>
    %141 = arith.subf %122, %140 : vector<1x128xf32>
    %142 = vector.broadcast %139 : vector<1x128xf32> to vector<128x128xf32>
    %143 = arith.mulf %120, %142 : vector<128x128xf32>
    %144 = vector.broadcast %141 : vector<1x128xf32> to vector<128x128xf32>
    %145 = arith.addf %143, %144 : vector<128x128xf32>
    %c0_72 = arith.constant 0 : index
    %c0_73 = arith.constant 0 : index
    %146 = vector.load %arg6[%c0_72, %c0_73] : memref<128x128xf32, #tpu.memory_space<vmem>>, vector<128x128xf32>
    tpu.vector_store %arg6[%c0_72, %c0_73], %145 {strides = array<i32>} : memref<128x128xf32, #tpu.memory_space<vmem>>, vector<128x128xf32>,
    %c0_74 = arith.constant 0 : index
    %c0_75 = arith.constant 0 : index
    %147 = vector.load %arg6[%c0_74, %c0_75] : memref<128x128xf32, #tpu.memory_space<vmem>>, vector<128x128xf32>
    %148 = arith.truncf %147 : vector<128x128xf32> to vector<128x128xbf16>
    %c3_76 = arith.constant 3 : index
    %c0_77 = arith.constant 0 : index
    %c0_78 = arith.constant 0 : index
    %149 = vector.load %arg4[%c3_76, %c0_77, %c0_78] : memref<4x128x128xbf16, #tpu.memory_space<vmem>>, vector<1x128x128xbf16>
    %150 = vector.shape_cast %149 : vector<1x128x128xbf16> to vector<128x128xbf16>
    %cst_79 = arith.constant dense<0.000000e+00> : vector<128x128xf32>
    %151 = tpu.matmul %148, %150, %cst_79 {dimension_numbers = #tpu.dot_dimension_numbers<[1], [0], [0], [1], [0, 0, 1, 1], [], []>} : vector<128x128xbf16>, vector<128x128xbf16>, vector<128x128xf32> -> vector<128x128xf32>
    %152 = arith.truncf %151 : vector<128x128xf32> to vector<128x128xbf16>
    %cst_80 = arith.constant dense<0.000000e+00> : vector<128x128xf32>
    %153 = tpu.matmul %32, %152, %cst_80 {dimension_numbers = #tpu.dot_dimension_numbers<[1], [0], [0], [1], [0, 0, 1, 1], [], []>} : vector<128x128xbf16>, vector<128x128xbf16>, vector<128x128xf32> -> vector<128x128xf32>
    %c5 = arith.constant 5 : index
    %c0_81 = arith.constant 0 : index
    %154 = vector.load %arg3[%c5, %c0_81] : memref<16x128xf32, #tpu.memory_space<vmem>>, vector<1x128xf32>
    %155 = vector.broadcast %154 : vector<1x128xf32> to vector<128x128xf32>
    %156 = arith.addf %153, %155 : vector<128x128xf32>
    %cst_82 = arith.constant 0.000000e+00 : f32
    %157 = vector.broadcast %cst_82 : f32 to vector<128x128xf32>
    %158 = arith.maximumf %156, %157 : vector<128x128xf32>
    %c9 = arith.constant 9 : index
    %c0_83 = arith.constant 0 : index
    %159 = vector.load %arg3[%c9, %c0_83] : memref<16x128xf32, #tpu.memory_space<vmem>>, vector<1x128xf32>
    %c13 = arith.constant 13 : index
    %c0_84 = arith.constant 0 : index
    %160 = vector.load %arg3[%c13, %c0_84] : memref<16x128xf32, #tpu.memory_space<vmem>>, vector<1x128xf32>
    %161 = arith.mulf %158, %158 : vector<128x128xf32>
    %162 = tpu.concatenate %158, %161 in 1 : vector<128x128xf32>, vector<128x128xf32> -> vector<128x256xf32>
    %cst_85 = arith.constant dense<0.000000e+00> : vector<8x256xf32>
    %163 = tpu.matmul %0, %162, %cst_85 {dimension_numbers = #tpu.dot_dimension_numbers<[1], [0], [0], [1], [0, 0, 1, 1], [], []>} : vector<8x128xf32>, vector<128x256xf32>, vector<8x256xf32> -> vector<8x256xf32>
    %164 = vector.extract_strided_slice %163 {offsets = [0, 0], sizes = [1, 128], strides = [1, 1]} : vector<8x256xf32> to vector<1x128xf32>
    %cst_86 = arith.constant 7.812500e-03 : f32
    %165 = vector.broadcast %cst_86 : f32 to vector<1x128xf32>
    %166 = arith.mulf %164, %165 : vector<1x128xf32>
    %167 = vector.extract_strided_slice %163 {offsets = [0, 128], sizes = [1, 128], strides = [1, 1]} : vector<8x256xf32> to vector<1x128xf32>
    %cst_87 = arith.constant 7.812500e-03 : f32
    %168 = vector.broadcast %cst_87 : f32 to vector<1x128xf32>
    %169 = arith.mulf %167, %168 : vector<1x128xf32>
    %170 = arith.mulf %166, %166 : vector<1x128xf32>
    %171 = arith.subf %169, %170 : vector<1x128xf32>
    %cst_88 = arith.constant 0.000000e+00 : f32
    %172 = vector.broadcast %cst_88 : f32 to vector<1x128xf32>
    %173 = arith.maximumf %171, %172 : vector<1x128xf32>
    %cst_89 = arith.constant 9.99999974E-6 : f32
    %174 = vector.broadcast %cst_89 : f32 to vector<1x128xf32>
    %175 = arith.addf %173, %174 : vector<1x128xf32>
    %176 = math.rsqrt %175 : vector<1x128xf32>
    %177 = arith.mulf %159, %176 : vector<1x128xf32>
    %178 = arith.mulf %166, %177 : vector<1x128xf32>
    %179 = arith.subf %160, %178 : vector<1x128xf32>
    %180 = vector.broadcast %177 : vector<1x128xf32> to vector<128x128xf32>
    %181 = arith.mulf %158, %180 : vector<128x128xf32>
    %182 = vector.broadcast %179 : vector<1x128xf32> to vector<128x128xf32>
    %183 = arith.addf %181, %182 : vector<128x128xf32>
    %c0_90 = arith.constant 0 : index
    %c0_91 = arith.constant 0 : index
    %184 = vector.load %arg6[%c0_90, %c0_91] : memref<128x128xf32, #tpu.memory_space<vmem>>, vector<128x128xf32>
    tpu.vector_store %arg6[%c0_90, %c0_91], %183 {strides = array<i32>} : memref<128x128xf32, #tpu.memory_space<vmem>>, vector<128x128xf32>,
    %c0_92 = arith.constant 0 : index
    %c0_93 = arith.constant 0 : index
    %185 = vector.load %arg2[%c0_92, %c0_93] : memref<8x128xbf16, #tpu.memory_space<vmem>>, vector<8x128xbf16>
    %c0_94 = arith.constant 0 : index
    %c0_95 = arith.constant 0 : index
    %186 = vector.load %arg6[%c0_94, %c0_95] : memref<128x128xf32, #tpu.memory_space<vmem>>, vector<128x128xf32>
    %187 = arith.truncf %186 : vector<128x128xf32> to vector<128x128xbf16>
    %cst_96 = arith.constant dense<0.000000e+00> : vector<8x128xf32>
    %188 = tpu.matmul %185, %187, %cst_96 {dimension_numbers = #tpu.dot_dimension_numbers<[1], [0], [0], [1], [0, 0, 1, 1], [], []>} : vector<8x128xbf16>, vector<128x128xbf16>, vector<8x128xf32> -> vector<8x128xf32>
    %c0_97 = arith.constant 0 : index
    %c0_98 = arith.constant 0 : index
    %189 = vector.load %arg5[%c0_97, %c0_98] : memref<8x128xf32, #tpu.memory_space<vmem>>, vector<8x128xf32>
    tpu.vector_store %arg5[%c0_97, %c0_98], %188 {strides = array<i32>} : memref<8x128xf32, #tpu.memory_space<vmem>>, vector<8x128xf32>,
    return
  }
}

</mosaic_0001>

<bundles_post_ra>
// kernel: mesh_gnn_forward.1
= control target key start
LH: loop header
LB: loop body
LE: loop exit
PB: predicated region body
PF: predicated region fallthrough
CT: control target
= control target key end

     0   :  { %vm53_vm0 = vcmask 64512   ;;  %v2808_v0 = vmov 0.0   ;;  %v2809_v49 = vmov 1.0   ;;  %vm2810_vm1 = vmmov 0   ;;  %s3718_s1 = inlined_call_operand.vmem [shape: f32[128,8], index: 1, kind: input, shape index: {}]   ;;  %s3719_s4 = inlined_call_operand.vmem [shape: bf16[4,128,128], index: 4, kind: input, shape index: {}]   ;;  %s3720_s3 = inlined_call_operand.vmem [shape: f32[16,128], index: 3, kind: input, shape index: {}]   ;;  %s3721_s0 = inlined_call_operand.vmem [shape: bf16[128,128], index: 0, kind: input, shape index: {}]   ;;  %s3722_s2 = inlined_call_operand.vmem [shape: bf16[8,128], index: 2, kind: input, shape index: {}]   ;;  %s3723_s5 = inlined_call_operand.vmem [shape: f32[8,128], index: 5, kind: output, shape index: {}]  }
   0x1   :  { %36 = vst [vmem:[#allocation2 + $0x78] sm:$0xff] %v2808_v0  ;;  %v52_v1 = vld [vmem:[%s3718_s1 + $0x78] sm:$0xff]  ;;  %21 = vst [vmem:[#allocation2] sm:$0xff] %v2808_v0  ;;  %v51_v2 = vld [vmem:[%s3718_s1 + $0x70] sm:$0xff]  ;;  %168 = vmatprep.mubr.f32.mxu0 %v2808_v0 }
   0x2   :  { %22 = vst [vmem:[#allocation2 + $0x8] sm:$0xff] %v2808_v0  ;;  %23 = vst [vmem:[#allocation2 + $0x10] sm:$0xff] %v2808_v0  ;;  %v50_v3 = vld [vmem:[%s3718_s1 + $0x68] sm:$0xff]  ;;  %v49_v4 = vld [vmem:[%s3718_s1 + $0x60] sm:$0xff] }
   0x3   :  { %24 = vst [vmem:[#allocation2 + $0x18] sm:$0xff] %v2808_v0  ;;  %25 = vst [vmem:[#allocation2 + $0x20] sm:$0xff] %v2808_v0  ;;  %v48_v5 = vld [vmem:[%s3718_s1 + $0x58] sm:$0xff]  ;;  %v47_v6 = vld [vmem:[%s3718_s1 + $0x50] sm:$0xff] }
   0x4   :  { %26 = vst [vmem:[#allocation2 + $0x28] sm:$0xff] %v2808_v0  ;;  %27 = vst [vmem:[#allocation2 + $0x30] sm:$0xff] %v2808_v0  ;;  %v46_v7 = vld [vmem:[%s3718_s1 + $0x48] sm:$0xff]  ;;  %v45_v8 = vld [vmem:[%s3718_s1 + $0x40] sm:$0xff] }
   0x5   :  { %28 = vst [vmem:[#allocation2 + $0x38] sm:$0xff] %v2808_v0  ;;  %29 = vst [vmem:[#allocation2 + $0x40] sm:$0xff] %v2808_v0  ;;  %v44_v9 = vld [vmem:[%s3718_s1 + $0x38] sm:$0xff]  ;;  %v43_v10 = vld [vmem:[%s3718_s1 + $0x30] sm:$0xff] }
   0x6   :  { %30 = vst [vmem:[#allocation2 + $0x48] sm:$0xff] %v2808_v0  ;;  %31 = vst [vmem:[#allocation2 + $0x50] sm:$0xff] %v2808_v0  ;;  %v42_v11 = vld [vmem:[%s3718_s1 + $0x28] sm:$0xff]  ;;  %v41_v12 = vld [vmem:[%s3718_s1 + $0x20] sm:$0xff] }
   0x7   :  { %32 = vst [vmem:[#allocation2 + $0x58] sm:$0xff] %v2808_v0  ;;  %33 = vst [vmem:[#allocation2 + $0x60] sm:$0xff] %v2808_v0  ;;  %v40_v13 = vld [vmem:[%s3718_s1 + $0x18] sm:$0xff]  ;;  %v39_v14 = vld [vmem:[%s3718_s1 + $0x10] sm:$0xff] }
   0x8   :  { %34 = vst [vmem:[#allocation2 + $0x68] sm:$0xff] %v2808_v0  ;;  %35 = vst [vmem:[#allocation2 + $0x70] sm:$0xff] %v2808_v0  ;;  %v38_v15 = vld [vmem:[%s3718_s1 + $0x8] sm:$0xff]  ;;  %v37_v16 = vld [vmem:[%s3718_s1] sm:$0xff] }
   0x9   :  { %69 = vst.msk [vmem:[#allocation2 + $0x78] sm:$0xff] %vm53_vm0, %v52_v1  ;;  %68 = vst.msk [vmem:[#allocation2 + $0x70] sm:$0xff] %vm53_vm0, %v51_v2  ;;  %v2750_v50 = vld [vmem:[%s3719_s4 + $0x38] sm:$0xff]   ;;  %v2751_v51 = vld [vmem:[%s3719_s4 + $0x30] sm:$0xff]  }
   0xa   :  { %67 = vst.msk [vmem:[#allocation2 + $0x68] sm:$0xff] %vm53_vm0, %v50_v3  ;;  %66 = vst.msk [vmem:[#allocation2 + $0x60] sm:$0xff] %vm53_vm0, %v49_v4  ;;  %2471 = vmatprep.subr.bf16.mxu1 %v2750_v50  ;;  %v2752_v52 = vld [vmem:[%s3719_s4 + $0x28] sm:$0xff]   ;;  %v2753_v53 = vld [vmem:[%s3719_s4 + $0x20] sm:$0xff]   ;;  %v185_v3 = vlaneseq }
   0xb   :  { %65 = vst.msk [vmem:[#allocation2 + $0x58] sm:$0xff] %vm53_vm0, %v48_v5  ;;  %64 = vst.msk [vmem:[#allocation2 + $0x50] sm:$0xff] %vm53_vm0, %v47_v6  ;;  %2472 = vmatpush3.bf16.msra.mxu1 %v2750_v50  ;;  %v2754_v54 = vld [vmem:[%s3719_s4 + $0x18] sm:$0xff]   ;;  %v2755_v55 = vld [vmem:[%s3719_s4 + $0x10] sm:$0xff]  }
   0xc   :  { %63 = vst.msk [vmem:[#allocation2 + $0x48] sm:$0xff] %vm53_vm0, %v46_v7  ;;  %62 = vst.msk [vmem:[#allocation2 + $0x40] sm:$0xff] %vm53_vm0, %v45_v8  ;;  %2473 = vmatprep.subr.bf16.mxu1 %v2751_v51  ;;  %v2756_v56 = vld [vmem:[%s3719_s4 + $0x8] sm:$0xff]   ;;  %v2757_v57 = vld [vmem:[%s3719_s4] sm:$0xff]   ;;  %v186_v4 = vshrl.u32 %v185_v3, 7 }
   0xd   :  { %61 = vst.msk [vmem:[#allocation2 + $0x38] sm:$0xff] %vm53_vm0, %v44_v9  ;;  %60 = vst.msk [vmem:[#allocation2 + $0x30] sm:$0xff] %vm53_vm0, %v43_v10  ;;  %v86_v5 = vld [vmem:[%s3720_s3] sm:$0x1]  ;;  %v87_v9 = vld [vmem:[%s3720_s3 + $0x1] sm:$0x1] }
   0xe   :  { %59 = vst.msk [vmem:[#allocation2 + $0x28] sm:$0xff] %vm53_vm0, %v42_v11  ;;  %58 = vst.msk [vmem:[#allocation2 + $0x20] sm:$0xff] %vm53_vm0, %v41_v12  ;;  %v3025_v6 = vsub.s32 0, %v186_v4 }
   0xf   :  { %57 = vst.msk [vmem:[#allocation2 + $0x18] sm:$0xff] %vm53_vm0, %v40_v13  ;;  %56 = vst.msk [vmem:[#allocation2 + $0x10] sm:$0xff] %vm53_vm0, %v39_v14  ;;  %2474 = vmatpush3.bf16.msra.mxu1 %v2751_v51 }
  0x10   :  { %55 = vst.msk [vmem:[#allocation2 + $0x8] sm:$0xff] %vm53_vm0, %v38_v15  ;;  %54 = vst.msk [vmem:[#allocation2] sm:$0xff] %vm53_vm0, %v37_v16  ;;  %v2922_v17 = vld [vmem:[#allocation2 + $0x78] sm:$0xff]  ;;  %v2924_v18 = vld [vmem:[#allocation2 + $0x70] sm:$0xff]  ;;  %2475 = vmatprep.subr.bf16.mxu1 %v2752_v52 }
  0x11   :  { %v2926_v19 = vld [vmem:[#allocation2 + $0x68] sm:$0xff]  ;;  %v103_v20 = vmul.f32 %v2922_v17, %v2922_v17  ;;  %v102_v21 = vmul.f32 %v2924_v18, %v2924_v18  ;;  %v2932_v22 = vld [vmem:[#allocation2 + $0x60] sm:$0xff] }
  0x12   :  { %v101_v23 = vmul.f32 %v2926_v19, %v2926_v19  ;;  %v2937_v24 = vld [vmem:[#allocation2 + $0x58] sm:$0xff]  ;;  %v100_v25 = vmul.f32 %v2932_v22, %v2932_v22  ;;  %v2942_v26 = vld [vmem:[#allocation2 + $0x50] sm:$0xff] }
  0x13   :  { %104 = vmatprep.subr.mxu0 %v103_v20  ;;  %v99_v27 = vmul.f32 %v2937_v24, %v2937_v24  ;;  %v2947_v28 = vld [vmem:[#allocation2 + $0x48] sm:$0xff]  ;;  %v98_v29 = vmul.f32 %v2942_v26, %v2942_v26  ;;  %v2952_v30 = vld [vmem:[#allocation2 + $0x40] sm:$0xff]  ;;  %2476 = vmatpush3.bf16.msra.mxu1 %v2752_v52 }
  0x14   :  { %105 = vmatpush1.msra.mxu0 %v2922_v17  ;;  %v97_v31 = vmul.f32 %v2947_v28, %v2947_v28  ;;  %v2957_v32 = vld [vmem:[#allocation2 + $0x38] sm:$0xff]  ;;  %v96_v33 = vmul.f32 %v2952_v30, %v2952_v30  ;;  %v2962_v34 = vld [vmem:[#allocation2 + $0x30] sm:$0xff]  ;;  %2477 = vmatprep.subr.bf16.mxu1 %v2753_v53 }
  0x15   :  { %106 = vmatprep.subr.mxu0 %v102_v21  ;;  %v95_v35 = vmul.f32 %v2957_v32, %v2957_v32  ;;  %v2967_v36 = vld [vmem:[#allocation2 + $0x28] sm:$0xff]  ;;  %v94_v37 = vmul.f32 %v2962_v34, %v2962_v34  ;;  %v2972_v38 = vld [vmem:[#allocation2 + $0x20] sm:$0xff] }
  0x16   :  { %107 = vmatpush1.msra.mxu0 %v2924_v18  ;;  %v93_v39 = vmul.f32 %v2967_v36, %v2967_v36  ;;  %v2977_v40 = vld [vmem:[#allocation2 + $0x18] sm:$0xff]  ;;  %v92_v41 = vmul.f32 %v2972_v38, %v2972_v38  ;;  %v2982_v42 = vld [vmem:[#allocation2 + $0x10] sm:$0xff] }
  0x17   :  { %108 = vmatprep.subr.mxu0 %v101_v23  ;;  %v91_v43 = vmul.f32 %v2977_v40, %v2977_v40  ;;  %v2987_v44 = vld [vmem:[#allocation2 + $0x8] sm:$0xff]  ;;  %v90_v45 = vmul.f32 %v2982_v42, %v2982_v42  ;;  %v70_v46 = vld [vmem:[#allocation2] sm:$0xff]  ;;  %2478 = vmatpush3.bf16.msra.mxu1 %v2753_v53 }
  0x18   :  { %109 = vmatpush1.msra.mxu0 %v2926_v19  ;;  %v89_v47 = vmul.f32 %v2987_v44, %v2987_v44  ;;  %v88_v48 = vmul.f32 %v70_v46, %v70_v46  ;;  %2479 = vmatprep.subr.bf16.mxu1 %v2754_v54 }
  0x19   :  { %110 = vmatprep.subr.mxu0 %v100_v25 }
  0x1a   :  { %111 = vmatpush1.msra.mxu0 %v2932_v22 }
  0x1b   :  { %112 = vmatprep.subr.mxu0 %v99_v27  ;;  %2480 = vmatpush3.bf16.msra.mxu1 %v2754_v54 }
  0x1c   :  { %113 = vmatpush1.msra.mxu0 %v2937_v24  ;;  %2481 = vmatprep.subr.bf16.mxu1 %v2755_v55 }
  0x1d   :  { %114 = vmatprep.subr.mxu0 %v98_v29 }
  0x1e   :  { %115 = vmatpush1.msra.mxu0 %v2942_v26 }
  0x1f   :  { %116 = vmatprep.subr.mxu0 %v97_v31  ;;  %2482 = vmatpush3.bf16.msra.mxu1 %v2755_v55 }
  0x20   :  { %117 = vmatpush1.msra.mxu0 %v2947_v28  ;;  %2483 = vmatprep.subr.bf16.mxu1 %v2756_v56 }
  0x21   :  { %118 = vmatprep.subr.mxu0 %v96_v33 }
  0x22   :  { %119 = vmatpush1.msra.mxu0 %v2952_v30 }
  0x23   :  { %120 = vmatprep.subr.mxu0 %v95_v35  ;;  %2484 = vmatpush3.bf16.msra.mxu1 %v2756_v56 }
  0x24   :  { %121 = vmatpush1.msra.mxu0 %v2957_v32  ;;  %2485 = vmatprep.subr.bf16.mxu1 %v2757_v57 }
  0x25   :  { %122 = vmatprep.subr.mxu0 %v94_v37 }
  0x26   :  { %123 = vmatpush1.msra.mxu0 %v2962_v34 }
  0x27   :  { %124 = vmatprep.subr.mxu0 %v93_v39  ;;  %2486 = vmatpush3.bf16.msra.mxu1 %v2757_v57 }
  0x28   :  { %125 = vmatpush1.msra.mxu0 %v2967_v36 }
  0x29   :  { %126 = vmatprep.subr.mxu0 %v92_v41 }
  0x2a   :  { %127 = vmatpush1.msra.mxu0 %v2972_v38 }
  0x2b   :  { %128 = vmatprep.subr.mxu0 %v91_v43 }
  0x2c   :  { %129 = vmatpush1.msra.mxu0 %v2977_v40 }
  0x2d   :  { %130 = vmatprep.subr.mxu0 %v90_v45 }
  0x2e   :  { %131 = vmatpush1.msra.mxu0 %v2982_v42 }
  0x2f   :  { %132 = vmatprep.subr.mxu0 %v89_v47 }
  0x30   :  { %133 = vmatpush1.msra.mxu0 %v2987_v44 }
  0x31   :  { %134 = vmatprep.subr.mxu0 %v88_v48 }
  0x32   :  { %135 = vmatpush1.msra.mxu0 %v70_v46 }
  0x33   :  { %169 = vmatmul.mubr.f32.vlgmr.msra.gmra.mxu0 %v2809_v49 }
  0xf3   :  { %v170_v58 = vpop.f32.mrf.mxu0 }
  0xf4   :  { %v175_v59 = vmul.f32 0.0078125, %v170_v58 }
  0xf5   :  { %v172_v60 = vpop.f32.mrf.mxu0 }
  0xf6   :  { %v177_v61 = vmul.f32 %v175_v59, %v175_v59  ;;  %v176_v62 = vmul.f32 0.0078125, %v172_v60 }
  0xf8   :  { %v178_v63 = vsub.f32 %v176_v62, %v177_v61 }
  0xfa   :  { %v179_v1 = vmax.f32 %v178_v63, 0.0 }
  0xfc   :  { %v180_v2 = vadd.f32 1e-05, %v179_v1 }
  0xfe   :  { %2790 = vrsqrt.f32 %v180_v2 }
 0x10b   :  { %v2791_v7 = vpop.eup %2790 }
 0x10c   :  { %v182_v8 = vmul.f32 %v2791_v7, %v86_v5 }
 0x10e   :  { %v183_v10 = vmul.f32 %v182_v8, %v175_v59  ;;  %v188_v11 = vrot.slane %v182_v8, %v3025_v6 }
 0x110   :  { %v184_v12 = vsub.f32 %v87_v9, %v183_v10  ;;  %v189_v13 = vmul.f32 %v188_v11, %v70_v46  ;;  %v190_v15 = vmul.f32 %v188_v11, %v2987_v44  ;;  %v191_v16 = vmul.f32 %v188_v11, %v2982_v42 }
 0x111   :  { %v192_v20 = vmul.f32 %v188_v11, %v2977_v40  ;;  %v193_v21 = vmul.f32 %v188_v11, %v2972_v38  ;;  %v194_v23 = vmul.f32 %v188_v11, %v2967_v36  ;;  %v195_v43 = vmul.f32 %v188_v11, %v2962_v34 }
 0x112   :  { %v208_v14 = vrot.slane %v184_v12, %v3025_v6  ;;  %v196_v42 = vmul.f32 %v188_v11, %v2957_v32  ;;  %v197_v38 = vmul.f32 %v188_v11, %v2952_v30  ;;  %v198_v36 = vmul.f32 %v188_v11, %v2947_v28 }
 0x113   :  { %v199_v50 = vmul.f32 %v188_v11, %v2942_v26  ;;  %v200_v51 = vmul.f32 %v188_v11, %v2937_v24  ;;  %v201_v34 = vmul.f32 %v188_v11, %v2932_v22  ;;  %v202_v32 = vmul.f32 %v188_v11, %v2926_v19  ;;  %v3051_v19 = vld [vmem:[%s3721_s0] sm:$0xff]  }
 0x114   :  { %v209_v25 = vadd.f32 %v208_v14, %v189_v13  ;;  %v210_v27 = vadd.f32 %v208_v14, %v190_v15  ;;  %v211_v29 = vadd.f32 %v208_v14, %v191_v16  ;;  %v212_v31 = vadd.f32 %v208_v14, %v192_v20  ;;  %2519 = vmatprep.mubr.bf16.mxu0 %v3051_v19 }
 0x115   :  { %v213_v33 = vadd.f32 %v208_v14, %v193_v21  ;;  %v214_v35 = vadd.f32 %v208_v14, %v194_v23  ;;  %v215_v40 = vadd.f32 %v208_v14, %v195_v43  ;;  %v216_v44 = vadd.f32 %v208_v14, %v196_v42  ;;  %v3057_v21 = vld [vmem:[%s3721_s0 + $0x8] sm:$0xff]   ;;  %v3062_v23 = vld [vmem:[%s3721_s0 + $0x10] sm:$0xff]  }
 0x116   :  { %v273_v37 = vpack.c.bf16 %v210_v27, %v209_v25  ;;  %v274_v39 = vpack.c.bf16 %v212_v31, %v211_v29  ;;  %v217_v45 = vadd.f32 %v208_v14, %v197_v38  ;;  %v218_v46 = vadd.f32 %v208_v14, %v198_v36  ;;  %v3069_v25 = vld [vmem:[%s3721_s0 + $0x18] sm:$0xff]   ;;  %v3074_v27 = vld [vmem:[%s3721_s0 + $0x20] sm:$0xff]   ;;  %v3081_v29 = vld [vmem:[%s3721_s0 + $0x28] sm:$0xff]  }
 0x117   :  { %v275_v41 = vpack.c.bf16 %v214_v35, %v213_v33  ;;  %v276_v47 = vpack.c.bf16 %v216_v44, %v215_v40  ;;  %v219_v52 = vadd.f32 %v208_v14, %v199_v50  ;;  %v220_v30 = vadd.f32 %v208_v14, %v200_v51  ;;  %v3086_v31 = vld [vmem:[%s3721_s0 + $0x30] sm:$0xff]   ;;  %v3093_v33 = vld [vmem:[%s3721_s0 + $0x38] sm:$0xff]  }
 0x118   :  { %2487 = vmatprep.mubr.bf16.mxu1 %v273_v37  ;;  %v277_v48 = vpack.c.bf16 %v218_v46, %v217_v45  ;;  %v221_v53 = vadd.f32 %v208_v14, %v201_v34  ;;  %v222_v28 = vadd.f32 %v208_v14, %v202_v32  ;;  %v203_v56 = vmul.f32 %v188_v11, %v2924_v18 }
 0x119   :  { %2488 = vmatmul.mubr.bf16.vlgmr.msra.gmra.mxu1 %v274_v39  ;;  %v278_v54 = vpack.c.bf16 %v220_v30, %v219_v52  ;;  %v204_v57 = vmul.f32 %v188_v11, %v2922_v17 }
 0x11a   :  { %2491 = vmatprep.mubr.bf16.mxu1 %v275_v41  ;;  %v279_v55 = vpack.c.bf16 %v222_v28, %v221_v53  ;;  %v223_v26 = vadd.f32 %v208_v14, %v203_v56 }
 0x11b   :  { %v224_v58 = vadd.f32 %v208_v14, %v204_v57 }
 0x11d   :  { %v280_v24 = vpack.c.bf16 %v224_v58, %v223_v26 }
 0x121   :  { %2492 = vmatmul.mubr.bf16.gmra.mxu1 %v276_v47 }
 0x122   :  { %2495 = vmatprep.mubr.bf16.mxu1 %v277_v48  ;;  %v3105_v48 = vld [vmem:[%s3720_s3 + $0x2] ss:$0 sm:$0xff] }
 0x129   :  { %2496 = vmatmul.mubr.bf16.gmra.mxu1 %v278_v54 }
 0x12a   :  { %2499 = vmatprep.mubr.bf16.mxu1 %v279_v55 }
 0x131   :  { %2500 = vmatmul.mubr.bf16.gmra.mxu1 %v280_v24 }
 0x132   :  { %698 = vmatprep.mubr.f32.mxu1 %v2808_v0 }
 0x1d9   :  { %v2489_v22 = vpop.f32.mrf.mxu1 }
 0x1db   :  { %v379_v59 = vpop.f32.mrf.mxu1 }
 0x1dd   :  { %v2490_v60 = vpop.f32.mrf.mxu1 }
 0x1de   :  { %v443_v16 = vpack.c.bf16 %v2490_v60, %v2489_v22 }
 0x1df   :  { %v382_v18 = vpop.f32.mrf.mxu1 }
 0x1e0   :  { %v442_v20 = vpack.c.bf16 %v382_v18, %v379_v59 }
 0x1e1   :  { %v2493_v61 = vpop.f32.mrf.mxu1 }
 0x1e3   :  { %v395_v17 = vpop.f32.mrf.mxu1 }
 0x1e5   :  { %v2494_v62 = vpop.f32.mrf.mxu1 }
 0x1e6   :  { %v445_v14 = vpack.c.bf16 %v2494_v62, %v2493_v61 }
 0x1e7   :  { %v398_v63 = vpop.f32.mrf.mxu1 }
 0x1e8   :  { %v444_v15 = vpack.c.bf16 %v398_v63, %v395_v17 }
 0x1e9   :  { %v2497_v1 = vpop.f32.mrf.mxu1 }
 0x1eb   :  { %v411_v2 = vpop.f32.mrf.mxu1 }
 0x1ed   :  { %v2498_v3 = vpop.f32.mrf.mxu1 }
 0x1ee   :  { %v447_v12 = vpack.c.bf16 %v2498_v3, %v2497_v1 }
 0x1ef   :  { %v414_v4 = vpop.f32.mrf.mxu1 }
 0x1f0   :  { %v446_v13 = vpack.c.bf16 %v414_v4, %v411_v2 }
 0x1f1   :  { %v2501_v5 = vpop.f32.mrf.mxu1 }
 0x1f3   :  { %v427_v7 = vpop.f32.mrf.mxu1 }
 0x1f5   :  { %v2502_v8 = vpop.f32.mrf.mxu1 }
 0x1f6   :  { %v449_v9 = vpack.c.bf16 %v2502_v8, %v2501_v5 }
 0x1f7   :  { %v430_v10 = vpop.f32.mrf.mxu1 }
 0x1f8   :  { %v448_v11 = vpack.c.bf16 %v430_v10, %v427_v7  ;;  %2503 = vmatprep.subr.bf16.mxu0 %v449_v9 }
 0x1f9   :  { %2504 = vmatpush3.bf16.msra.mxu0 %v449_v9 }
 0x1fa   :  { %2505 = vmatprep.subr.bf16.mxu0 %v448_v11 }
 0x1fd   :  { %2506 = vmatpush3.bf16.msra.mxu0 %v448_v11 }
 0x1fe   :  { %2507 = vmatprep.subr.bf16.mxu0 %v447_v12 }
 0x201   :  { %2508 = vmatpush3.bf16.msra.mxu0 %v447_v12 }
 0x202   :  { %2509 = vmatprep.subr.bf16.mxu0 %v446_v13 }
 0x205   :  { %2510 = vmatpush3.bf16.msra.mxu0 %v446_v13 }
 0x206   :  { %2511 = vmatprep.subr.bf16.mxu0 %v445_v14 }
 0x209   :  { %2512 = vmatpush3.bf16.msra.mxu0 %v445_v14 }
 0x20a   :  { %2513 = vmatprep.subr.bf16.mxu0 %v444_v15 }
 0x20d   :  { %2514 = vmatpush3.bf16.msra.mxu0 %v444_v15 }
 0x20e   :  { %2515 = vmatprep.subr.bf16.mxu0 %v443_v16 }
 0x211   :  { %2516 = vmatpush3.bf16.msra.mxu0 %v443_v16 }
 0x212   :  { %2517 = vmatprep.subr.bf16.mxu0 %v442_v20 }
 0x215   :  { %2518 = vmatpush3.bf16.msra.mxu0 %v442_v20 }
 0x218   :  { %2520 = vmatmul.mubr.bf16.vlgmr.msra.gmra.mxu0 %v3057_v21 }
 0x219   :  { %2523 = vmatprep.mubr.bf16.mxu0 %v3062_v23 }
 0x220   :  { %2524 = vmatmul.mubr.bf16.gmra.mxu0 %v3069_v25 }
 0x221   :  { %2527 = vmatprep.mubr.bf16.mxu0 %v3074_v27 }
 0x228   :  { %2528 = vmatmul.mubr.bf16.gmra.mxu0 %v3081_v29 }
 0x229   :  { %2531 = vmatprep.mubr.bf16.mxu0 %v3086_v31 }
 0x230   :  { %2532 = vmatmul.mubr.bf16.gmra.mxu0 %v3093_v33 }
 0x2d8   :  { %v3096_v35 = vpop.f32.mrf.mxu0 }
 0x2d9   :  { %v546_v15 = vadd.f32 %v3096_v35, %v3105_v48 }
 0x2da   :  { %v3098_v37 = vpop.f32.mrf.mxu0 }
 0x2db   :  { %v3182_v35 = vmax.f32 %v546_v15, 0.0 }
 0x2dc   :  { %v2522_v39 = vpop.f32.mrf.mxu0 }
 0x2dd   :  { %v549_v12 = vadd.f32 %v2522_v39, %v3105_v48 }
 0x2de   :  { %v3100_v41 = vpop.f32.mrf.mxu0 }
 0x2df   :  { %v3175_v39 = vmax.f32 %v549_v12, 0.0 }
 0x2e0   :  { %v2525_v43 = vpop.f32.mrf.mxu0 }
 0x2e1   :  { %v562_v2 = vadd.f32 %v2525_v43, %v3105_v48  ;;  %v541_v43 = vadd.f32 %v3105_v48, %v3100_v41  ;;  %v621_v41 = vmul.f32 %v3175_v39, %v3175_v39 }
 0x2e2   :  { %v553_v42 = vpop.f32.mrf.mxu0 }
 0x2e3   :  { %v3156_v9 = vmax.f32 %v562_v2, 0.0  ;;  %v554_v10 = vadd.f32 %v3105_v48, %v553_v42  ;;  %v617_v2 = vld [vmem:[%s3720_s3 + $0xa] sm:$0x1] }
 0x2e4   :  { %v2526_v38 = vpop.f32.mrf.mxu0 }
 0x2e5   :  { %v565_v62 = vadd.f32 %v2526_v38, %v3105_v48  ;;  %v3170_v16 = vmax.f32 %v554_v10, 0.0  ;;  %v624_v20 = vmul.f32 %v3156_v9, %v3156_v9  ;;  %v538_v38 = vadd.f32 %v3105_v48, %v3098_v37 }
 0x2e6   :  { %v556_v36 = vpop.f32.mrf.mxu0 }
 0x2e7   :  { %v3150_v5 = vmax.f32 %v565_v62, 0.0  ;;  %v557_v7 = vadd.f32 %v3105_v48, %v556_v36  ;;  %v622_v36 = vmul.f32 %v3170_v16, %v3170_v16 }
 0x2e8   :  { %v2529_v40 = vpop.f32.mrf.mxu0 }
 0x2e9   :  { %v578_v26 = vadd.f32 %v2529_v40, %v3105_v48  ;;  %v3163_v13 = vmax.f32 %v557_v7, 0.0  ;;  %v625_v14 = vmul.f32 %v3150_v5, %v3150_v5  ;;  %v601_v40 = vmax.f32 %v541_v43, 0.0 }
 0x2ea   :  { %v569_v44 = vpop.f32.mrf.mxu0 }
 0x2eb   :  { %v3132_v18 = vmax.f32 %v578_v26, 0.0  ;;  %v570_v61 = vadd.f32 %v3105_v48, %v569_v44  ;;  %v623_v42 = vmul.f32 %v3163_v13, %v3163_v13  ;;  %v600_v44 = vmax.f32 %v538_v38, 0.0 }
 0x2ec   :  { %v2530_v45 = vpop.f32.mrf.mxu0  ;;  %v619_v37 = vmul.f32 %v601_v40, %v601_v40 }
 0x2ed   :  { %v581_v55 = vadd.f32 %v2530_v45, %v3105_v48  ;;  %v3145_v3 = vmax.f32 %v570_v61, 0.0  ;;  %v628_v4 = vmul.f32 %v3132_v18, %v3132_v18  ;;  %v620_v45 = vmul.f32 %v3182_v35, %v3182_v35 }
 0x2ee   :  { %v572_v46 = vpop.f32.mrf.mxu0 }
 0x2ef   :  { %v3126_v22 = vmax.f32 %v581_v55, 0.0  ;;  %v573_v59 = vadd.f32 %v3105_v48, %v572_v46  ;;  %v626_v11 = vmul.f32 %v3145_v3, %v3145_v3  ;;  %v618_v46 = vmul.f32 %v600_v44, %v600_v44 }
 0x2f0   :  { %v2533_v47 = vpop.f32.mrf.mxu0 }
 0x2f1   :  { %v594_v51 = vadd.f32 %v2533_v47, %v3105_v48  ;;  %v3139_v63 = vmax.f32 %v573_v59, 0.0  ;;  %v629_v1 = vmul.f32 %v3126_v22, %v3126_v22  ;;  %v2766_v47 = vld [vmem:[%s3719_s4 + $0x78] sm:$0xff]  }
 0x2f2   :  { %v585_v50 = vpop.f32.mrf.mxu0  ;;  %2535 = vmatprep.subr.bf16.mxu0 %v2766_v47 }
 0x2f3   :  { %v3109_v30 = vmax.f32 %v594_v51, 0.0  ;;  %v586_v53 = vadd.f32 %v3105_v48, %v585_v50  ;;  %v627_v8 = vmul.f32 %v3139_v63, %v3139_v63  ;;  %2536 = vmatpush3.bf16.msra.mxu0 %v2766_v47  ;;  %v2768_v50 = vld [vmem:[%s3719_s4 + $0x68] sm:$0xff]   ;;  %v2769_v51 = vld [vmem:[%s3719_s4 + $0x60] sm:$0xff]  }
 0x2f4   :  { %v2534_v34 = vpop.f32.mrf.mxu0 }
 0x2f5   :  { %v597_v32 = vadd.f32 %v2534_v34, %v3105_v48  ;;  %v3121_v58 = vmax.f32 %v586_v53, 0.0  ;;  %v632_v24 = vmul.f32 %v3109_v30, %v3109_v30  ;;  %v2770_v34 = vld [vmem:[%s3719_s4 + $0x58] sm:$0xff]   ;;  %v2773_v53 = vld [vmem:[%s3719_s4 + $0x40] sm:$0xff]  }
 0x2f6   :  { %v588_v52 = vpop.f32.mrf.mxu0 }
 0x2f7   :  { %v3112_v28 = vmax.f32 %v597_v32, 0.0  ;;  %v589_v54 = vadd.f32 %v3105_v48, %v588_v52  ;;  %v630_v17 = vmul.f32 %v3121_v58, %v3121_v58  ;;  %v2767_v48 = vld [vmem:[%s3719_s4 + $0x70] sm:$0xff]   ;;  %v2772_v52 = vld [vmem:[%s3719_s4 + $0x48] sm:$0xff]  }
 0x2f8   :  { %2537 = vmatprep.subr.bf16.mxu0 %v2767_v48  ;;  %v2771_v32 = vld [vmem:[%s3719_s4 + $0x50] sm:$0xff]  }
 0x2f9   :  { %v3116_v56 = vmax.f32 %v589_v54, 0.0  ;;  %v633_v57 = vmul.f32 %v3112_v28, %v3112_v28  ;;  %2538 = vmatpush3.bf16.msra.mxu0 %v2767_v48 }
 0x2fa   :  { %2539 = vmatprep.subr.bf16.mxu0 %v2768_v50 }
 0x2fb   :  { %634 = vmatprep.subr.mxu1 %v633_v57  ;;  %v631_v60 = vmul.f32 %v3116_v56, %v3116_v56 }
 0x2fc   :  { %635 = vmatpush1.msra.mxu1 %v3112_v28 }
 0x2fd   :  { %636 = vmatprep.subr.mxu1 %v632_v24  ;;  %2540 = vmatpush3.bf16.msra.mxu0 %v2768_v50 }
 0x2fe   :  { %637 = vmatpush1.msra.mxu1 %v3109_v30  ;;  %2541 = vmatprep.subr.bf16.mxu0 %v2769_v51 }
 0x2ff   :  { %638 = vmatprep.subr.mxu1 %v631_v60 }
 0x300   :  { %639 = vmatpush1.msra.mxu1 %v3116_v56 }
 0x301   :  { %640 = vmatprep.subr.mxu1 %v630_v17  ;;  %2542 = vmatpush3.bf16.msra.mxu0 %v2769_v51  ;;  %v616_v17 = vld [vmem:[%s3720_s3 + $0x6] sm:$0x1] }
 0x302   :  { %641 = vmatpush1.msra.mxu1 %v3121_v58  ;;  %2543 = vmatprep.subr.bf16.mxu0 %v2770_v34 }
 0x303   :  { %642 = vmatprep.subr.mxu1 %v629_v1 }
 0x304   :  { %643 = vmatpush1.msra.mxu1 %v3126_v22 }
 0x305   :  { %644 = vmatprep.subr.mxu1 %v628_v4  ;;  %2544 = vmatpush3.bf16.msra.mxu0 %v2770_v34 }
 0x306   :  { %645 = vmatpush1.msra.mxu1 %v3132_v18  ;;  %2545 = vmatprep.subr.bf16.mxu0 %v2771_v32 }
 0x307   :  { %646 = vmatprep.subr.mxu1 %v627_v8 }
 0x308   :  { %647 = vmatpush1.msra.mxu1 %v3139_v63 }
 0x309   :  { %648 = vmatprep.subr.mxu1 %v626_v11  ;;  %2546 = vmatpush3.bf16.msra.mxu0 %v2771_v32 }
 0x30a   :  { %649 = vmatpush1.msra.mxu1 %v3145_v3  ;;  %2547 = vmatprep.subr.bf16.mxu0 %v2772_v52 }
 0x30b   :  { %650 = vmatprep.subr.mxu1 %v625_v14 }
 0x30c   :  { %651 = vmatpush1.msra.mxu1 %v3150_v5 }
 0x30d   :  { %652 = vmatprep.subr.mxu1 %v624_v20  ;;  %2548 = vmatpush3.bf16.msra.mxu0 %v2772_v52 }
 0x30e   :  { %653 = vmatpush1.msra.mxu1 %v3156_v9  ;;  %2549 = vmatprep.subr.bf16.mxu0 %v2773_v53 }
 0x30f   :  { %654 = vmatprep.subr.mxu1 %v623_v42 }
 0x310   :  { %655 = vmatpush1.msra.mxu1 %v3163_v13 }
 0x311   :  { %656 = vmatprep.subr.mxu1 %v622_v36  ;;  %2550 = vmatpush3.bf16.msra.mxu0 %v2773_v53 }
 0x312   :  { %657 = vmatpush1.msra.mxu1 %v3170_v16 }
 0x313   :  { %658 = vmatprep.subr.mxu1 %v621_v41 }
 0x314   :  { %659 = vmatpush1.msra.mxu1 %v3175_v39 }
 0x315   :  { %660 = vmatprep.subr.mxu1 %v620_v45 }
 0x316   :  { %661 = vmatpush1.msra.mxu1 %v3182_v35 }
 0x317   :  { %662 = vmatprep.subr.mxu1 %v619_v37 }
 0x318   :  { %663 = vmatpush1.msra.mxu1 %v601_v40 }
 0x319   :  { %664 = vmatprep.subr.mxu1 %v618_v46 }
 0x31a   :  { %665 = vmatpush1.msra.mxu1 %v600_v44 }
 0x31b   :  { %699 = vmatmul.mubr.f32.vlgmr.msra.gmra.mxu1 %v2809_v49 }
 0x31c   :  { %2583 = vmatprep.mubr.bf16.mxu1 %v3051_v19 }
 0x3db   :  { %v700_v54 = vpop.f32.mrf.mxu1 }
 0x3dc   :  { %v705_v55 = vmul.f32 0.0078125, %v700_v54 }
 0x3dd   :  { %v702_v57 = vpop.f32.mrf.mxu1 }
 0x3de   :  { %v707_v26 = vmul.f32 %v705_v55, %v705_v55  ;;  %v706_v24 = vmul.f32 0.0078125, %v702_v57 }
 0x3e0   :  { %v708_v59 = vsub.f32 %v706_v24, %v707_v26 }
 0x3e2   :  { %v709_v60 = vmax.f32 %v708_v59, 0.0 }
 0x3e4   :  { %v710_v61 = vadd.f32 1e-05, %v709_v60 }
 0x3e6   :  { %2792 = vrsqrt.f32 %v710_v61 }
 0x3f3   :  { %v2793_v62 = vpop.eup %2792 }
 0x3f4   :  { %v712_v1 = vmul.f32 %v2793_v62, %v616_v17 }
 0x3f6   :  { %v713_v4 = vmul.f32 %v712_v1, %v705_v55  ;;  %v718_v7 = vrot.slane %v712_v1, %v3025_v6 }
 0x3f8   :  { %v714_v8 = vsub.f32 %v617_v2, %v713_v4  ;;  %v719_v10 = vmul.f32 %v718_v7, %v600_v44  ;;  %v720_v12 = vmul.f32 %v718_v7, %v601_v40  ;;  %v721_v14 = vmul.f32 %v718_v7, %v3182_v35 }
 0x3f9   :  { %v722_v15 = vmul.f32 %v718_v7, %v3175_v39  ;;  %v723_v20 = vmul.f32 %v718_v7, %v3170_v16  ;;  %v724_v43 = vmul.f32 %v718_v7, %v3163_v13  ;;  %v725_v40 = vmul.f32 %v718_v7, %v3156_v9 }
 0x3fa   :  { %v738_v11 = vrot.slane %v714_v8, %v3025_v6  ;;  %v726_v35 = vmul.f32 %v718_v7, %v3150_v5  ;;  %v727_v16 = vmul.f32 %v718_v7, %v3145_v3  ;;  %v728_v13 = vmul.f32 %v718_v7, %v3139_v63 }
 0x3fb   :  { %v729_v52 = vmul.f32 %v718_v7, %v3132_v18  ;;  %v730_v53 = vmul.f32 %v718_v7, %v3126_v22  ;;  %v731_v9 = vmul.f32 %v718_v7, %v3121_v58  ;;  %v732_v5 = vmul.f32 %v718_v7, %v3116_v56 }
 0x3fc   :  { %v739_v42 = vadd.f32 %v738_v11, %v719_v10  ;;  %v740_v38 = vadd.f32 %v738_v11, %v720_v12  ;;  %v741_v36 = vadd.f32 %v738_v11, %v721_v14  ;;  %v742_v41 = vadd.f32 %v738_v11, %v722_v15 }
 0x3fd   :  { %v743_v45 = vadd.f32 %v738_v11, %v723_v20  ;;  %v744_v37 = vadd.f32 %v738_v11, %v724_v43  ;;  %v745_v39 = vadd.f32 %v738_v11, %v725_v40  ;;  %v746_v48 = vadd.f32 %v738_v11, %v726_v35 }
 0x3fe   :  { %v787_v46 = vpack.c.bf16 %v740_v38, %v739_v42  ;;  %v788_v47 = vpack.c.bf16 %v742_v41, %v741_v36  ;;  %v747_v50 = vadd.f32 %v738_v11, %v727_v16  ;;  %v748_v51 = vadd.f32 %v738_v11, %v728_v13 }
 0x3ff   :  { %v789_v44 = vpack.c.bf16 %v744_v37, %v743_v45  ;;  %v790_v34 = vpack.c.bf16 %v746_v48, %v745_v39  ;;  %v749_v54 = vadd.f32 %v738_v11, %v729_v52  ;;  %v750_v3 = vadd.f32 %v738_v11, %v730_v53 }
 0x400   :  { %2551 = vmatprep.mubr.bf16.mxu0 %v787_v46  ;;  %v791_v32 = vpack.c.bf16 %v748_v51, %v747_v50  ;;  %v751_v55 = vadd.f32 %v738_v11, %v731_v9  ;;  %v752_v63 = vadd.f32 %v738_v11, %v732_v5  ;;  %v733_v24 = vmul.f32 %v718_v7, %v3109_v30 }
 0x401   :  { %2552 = vmatmul.mubr.bf16.vlgmr.msra.gmra.mxu0 %v788_v47  ;;  %v792_v57 = vpack.c.bf16 %v750_v3, %v749_v54  ;;  %v734_v59 = vmul.f32 %v718_v7, %v3112_v28 }
 0x402   :  { %2555 = vmatprep.mubr.bf16.mxu0 %v789_v44  ;;  %v793_v26 = vpack.c.bf16 %v752_v63, %v751_v55  ;;  %v753_v18 = vadd.f32 %v738_v11, %v733_v24 }
 0x403   :  { %v754_v60 = vadd.f32 %v738_v11, %v734_v59 }
 0x405   :  { %v794_v22 = vpack.c.bf16 %v754_v60, %v753_v18 }
 0x409   :  { %2556 = vmatmul.mubr.bf16.gmra.mxu0 %v790_v34 }
 0x40a   :  { %2559 = vmatprep.mubr.bf16.mxu0 %v791_v32  ;;  %v3261_v32 = vld [vmem:[%s3720_s3 + $0x3] ss:$0 sm:$0xff] }
 0x411   :  { %2560 = vmatmul.mubr.bf16.gmra.mxu0 %v792_v57 }
 0x412   :  { %2563 = vmatprep.mubr.bf16.mxu0 %v793_v26 }
 0x419   :  { %2564 = vmatmul.mubr.bf16.gmra.mxu0 %v794_v22 }
 0x41a   :  { %1165 = vmatprep.mubr.f32.mxu0 %v2808_v0 }
 0x4c1   :  { %v2553_v58 = vpop.f32.mrf.mxu0 }
 0x4c3   :  { %v894_v56 = vpop.f32.mrf.mxu0 }
 0x4c5   :  { %v2554_v61 = vpop.f32.mrf.mxu0 }
 0x4c6   :  { %v958_v41 = vpack.c.bf16 %v2554_v61, %v2553_v58 }
 0x4c7   :  { %v897_v17 = vpop.f32.mrf.mxu0 }
 0x4c8   :  { %v957_v45 = vpack.c.bf16 %v897_v17, %v894_v56 }
 0x4c9   :  { %v2557_v62 = vpop.f32.mrf.mxu0 }
 0x4cb   :  { %v910_v1 = vpop.f32.mrf.mxu0 }
 0x4cd   :  { %v2558_v2 = vpop.f32.mrf.mxu0 }
 0x4ce   :  { %v960_v38 = vpack.c.bf16 %v2558_v2, %v2557_v62 }
 0x4cf   :  { %v913_v4 = vpop.f32.mrf.mxu0 }
 0x4d0   :  { %v959_v36 = vpack.c.bf16 %v913_v4, %v910_v1 }
 0x4d1   :  { %v2561_v8 = vpop.f32.mrf.mxu0 }
 0x4d3   :  { %v926_v10 = vpop.f32.mrf.mxu0 }
 0x4d5   :  { %v2562_v30 = vpop.f32.mrf.mxu0 }
 0x4d6   :  { %v962_v43 = vpack.c.bf16 %v2562_v30, %v2561_v8 }
 0x4d7   :  { %v929_v12 = vpop.f32.mrf.mxu0 }
 0x4d8   :  { %v961_v42 = vpack.c.bf16 %v929_v12, %v926_v10 }
 0x4d9   :  { %v2565_v28 = vpop.f32.mrf.mxu0 }
 0x4db   :  { %v942_v7 = vpop.f32.mrf.mxu0 }
 0x4dd   :  { %v2566_v14 = vpop.f32.mrf.mxu0 }
 0x4de   :  { %v964_v11 = vpack.c.bf16 %v2566_v14, %v2565_v28 }
 0x4df   :  { %v945_v15 = vpop.f32.mrf.mxu0 }
 0x4e0   :  { %v963_v20 = vpack.c.bf16 %v945_v15, %v942_v7  ;;  %2567 = vmatprep.subr.bf16.mxu1 %v964_v11 }
 0x4e1   :  { %2568 = vmatpush3.bf16.msra.mxu1 %v964_v11 }
 0x4e2   :  { %2569 = vmatprep.subr.bf16.mxu1 %v963_v20 }
 0x4e5   :  { %2570 = vmatpush3.bf16.msra.mxu1 %v963_v20 }
 0x4e6   :  { %2571 = vmatprep.subr.bf16.mxu1 %v962_v43 }
 0x4e9   :  { %2572 = vmatpush3.bf16.msra.mxu1 %v962_v43 }
 0x4ea   :  { %2573 = vmatprep.subr.bf16.mxu1 %v961_v42 }
 0x4ed   :  { %2574 = vmatpush3.bf16.msra.mxu1 %v961_v42 }
 0x4ee   :  { %2575 = vmatprep.subr.bf16.mxu1 %v960_v38 }
 0x4f1   :  { %2576 = vmatpush3.bf16.msra.mxu1 %v960_v38 }
 0x4f2   :  { %2577 = vmatprep.subr.bf16.mxu1 %v959_v36 }
 0x4f5   :  { %2578 = vmatpush3.bf16.msra.mxu1 %v959_v36 }
 0x4f6   :  { %2579 = vmatprep.subr.bf16.mxu1 %v958_v41 }
 0x4f9   :  { %2580 = vmatpush3.bf16.msra.mxu1 %v958_v41 }
 0x4fa   :  { %2581 = vmatprep.subr.bf16.mxu1 %v957_v45 }
 0x4fd   :  { %2582 = vmatpush3.bf16.msra.mxu1 %v957_v45 }
 0x500   :  { %2584 = vmatmul.mubr.bf16.vlgmr.msra.gmra.mxu1 %v3057_v21 }
 0x501   :  { %2587 = vmatprep.mubr.bf16.mxu1 %v3062_v23 }
 0x508   :  { %2588 = vmatmul.mubr.bf16.gmra.mxu1 %v3069_v25 }
 0x509   :  { %2591 = vmatprep.mubr.bf16.mxu1 %v3074_v27 }
 0x510   :  { %2592 = vmatmul.mubr.bf16.gmra.mxu1 %v3081_v29 }
 0x511   :  { %2595 = vmatprep.mubr.bf16.mxu1 %v3086_v31 }
 0x518   :  { %2596 = vmatmul.mubr.bf16.gmra.mxu1 %v3093_v33 }
 0x5c0   :  { %v3252_v37 = vpop.f32.mrf.mxu1 }
 0x5c1   :  { %v1013_v36 = vadd.f32 %v3252_v37, %v3261_v32 }
 0x5c2   :  { %v3254_v46 = vpop.f32.mrf.mxu1 }
 0x5c3   :  { %v3338_v37 = vmax.f32 %v1013_v36, 0.0 }
 0x5c4   :  { %v2586_v47 = vpop.f32.mrf.mxu1 }
 0x5c5   :  { %v1016_v43 = vadd.f32 %v2586_v47, %v3261_v32 }
 0x5c6   :  { %v3256_v44 = vpop.f32.mrf.mxu1 }
 0x5c7   :  { %v3331_v47 = vmax.f32 %v1016_v43, 0.0 }
 0x5c8   :  { %v2589_v40 = vpop.f32.mrf.mxu1 }
 0x5c9   :  { %v1029_v10 = vadd.f32 %v2589_v40, %v3261_v32  ;;  %v1008_v40 = vadd.f32 %v3261_v32, %v3256_v44  ;;  %v1088_v44 = vmul.f32 %v3331_v47, %v3331_v47 }
 0x5ca   :  { %v1020_v35 = vpop.f32.mrf.mxu1 }
 0x5cb   :  { %v3312_v11 = vmax.f32 %v1029_v10, 0.0  ;;  %v1021_v15 = vadd.f32 %v3261_v32, %v1020_v35 }
 0x5cc   :  { %v2590_v16 = vpop.f32.mrf.mxu1 }
 0x5cd   :  { %v1032_v2 = vadd.f32 %v2590_v16, %v3261_v32  ;;  %v3326_v41 = vmax.f32 %v1021_v15, 0.0  ;;  %v1091_v45 = vmul.f32 %v3312_v11, %v3312_v11  ;;  %v1005_v16 = vadd.f32 %v3261_v32, %v3254_v46 }
 0x5ce   :  { %v1023_v13 = vpop.f32.mrf.mxu1 }
 0x5cf   :  { %v3306_v28 = vmax.f32 %v1032_v2, 0.0  ;;  %v1024_v7 = vadd.f32 %v3261_v32, %v1023_v13  ;;  %v1089_v13 = vmul.f32 %v3326_v41, %v3326_v41 }
 0x5d0   :  { %v2593_v39 = vpop.f32.mrf.mxu1 }
 0x5d1   :  { %v1045_v18 = vadd.f32 %v2593_v39, %v3261_v32  ;;  %v3319_v42 = vmax.f32 %v1024_v7, 0.0  ;;  %v1092_v38 = vmul.f32 %v3306_v28, %v3306_v28  ;;  %v1068_v39 = vmax.f32 %v1008_v40, 0.0 }
 0x5d2   :  { %v1036_v48 = vpop.f32.mrf.mxu1 }
 0x5d3   :  { %v3288_v17 = vmax.f32 %v1045_v18, 0.0  ;;  %v1037_v62 = vadd.f32 %v3261_v32, %v1036_v48  ;;  %v1090_v35 = vmul.f32 %v3319_v42, %v3319_v42  ;;  %v1067_v48 = vmax.f32 %v1005_v16, 0.0 }
 0x5d4   :  { %v2594_v50 = vpop.f32.mrf.mxu1  ;;  %v1086_v46 = vmul.f32 %v1068_v39, %v1068_v39 }
 0x5d5   :  { %v1048_v26 = vadd.f32 %v2594_v50, %v3261_v32  ;;  %v3301_v30 = vmax.f32 %v1037_v62, 0.0  ;;  %v1095_v12 = vmul.f32 %v3288_v17, %v3288_v17  ;;  %v1087_v50 = vmul.f32 %v3338_v37, %v3338_v37  ;;  %v1083_v62 = vld [vmem:[%s3720_s3 + $0x7] sm:$0x1] }
 0x5d6   :  { %v1039_v51 = vpop.f32.mrf.mxu1 }
 0x5d7   :  { %v3282_v58 = vmax.f32 %v1048_v26, 0.0  ;;  %v1040_v56 = vadd.f32 %v3261_v32, %v1039_v51  ;;  %v1093_v20 = vmul.f32 %v3301_v30, %v3301_v30  ;;  %v1085_v51 = vmul.f32 %v1067_v48, %v1067_v48 }
 0x5d8   :  { %v2597_v34 = vpop.f32.mrf.mxu1 }
 0x5d9   :  { %v1061_v53 = vadd.f32 %v2597_v34, %v3261_v32  ;;  %v3295_v4 = vmax.f32 %v1040_v56, 0.0  ;;  %v1096_v8 = vmul.f32 %v3282_v58, %v3282_v58  ;;  %v2774_v34 = vld [vmem:[%s3719_s4 + $0xb8] sm:$0xff]  }
 0x5da   :  { %v1052_v52 = vpop.f32.mrf.mxu1  ;;  %2599 = vmatprep.subr.bf16.mxu1 %v2774_v34 }
 0x5db   :  { %v3265_v3 = vmax.f32 %v1061_v53, 0.0  ;;  %v1053_v55 = vadd.f32 %v3261_v32, %v1052_v52  ;;  %v1094_v14 = vmul.f32 %v3295_v4, %v3295_v4  ;;  %2600 = vmatpush3.bf16.msra.mxu1 %v2774_v34  ;;  %v2776_v52 = vld [vmem:[%s3719_s4 + $0xa8] sm:$0xff]   ;;  %v2778_v53 = vld [vmem:[%s3719_s4 + $0x98] sm:$0xff]  }
 0x5dc   :  { %v2598_v9 = vpop.f32.mrf.mxu1 }
 0x5dd   :  { %v1064_v5 = vadd.f32 %v2598_v9, %v3261_v32  ;;  %v3277_v60 = vmax.f32 %v1053_v55, 0.0  ;;  %v1099_v22 = vmul.f32 %v3265_v3, %v3265_v3  ;;  %v2779_v9 = vld [vmem:[%s3719_s4 + $0x90] sm:$0xff]  }
 0x5de   :  { %v1055_v54 = vpop.f32.mrf.mxu1 }
 0x5df   :  { %v3268_v63 = vmax.f32 %v1064_v5, 0.0  ;;  %v1056_v57 = vadd.f32 %v3261_v32, %v1055_v54  ;;  %v1097_v1 = vmul.f32 %v3277_v60, %v3277_v60  ;;  %v2775_v32 = vld [vmem:[%s3719_s4 + $0xb0] sm:$0xff]   ;;  %v2780_v5 = vld [vmem:[%s3719_s4 + $0x88] sm:$0xff]   ;;  %v2781_v54 = vld [vmem:[%s3719_s4 + $0x80] sm:$0xff]  }
 0x5e0   :  { %2601 = vmatprep.subr.bf16.mxu1 %v2775_v32 }
 0x5e1   :  { %v3272_v24 = vmax.f32 %v1056_v57, 0.0  ;;  %v1100_v59 = vmul.f32 %v3268_v63, %v3268_v63  ;;  %2602 = vmatpush3.bf16.msra.mxu1 %v2775_v32 }
 0x5e2   :  { %2603 = vmatprep.subr.bf16.mxu1 %v2776_v52 }
 0x5e3   :  { %1101 = vmatprep.subr.mxu0 %v1100_v59  ;;  %v1098_v61 = vmul.f32 %v3272_v24, %v3272_v24 }
 0x5e4   :  { %1102 = vmatpush1.msra.mxu0 %v3268_v63 }
 0x5e5   :  { %1103 = vmatprep.subr.mxu0 %v1099_v22  ;;  %2604 = vmatpush3.bf16.msra.mxu1 %v2776_v52 }
 0x5e6   :  { %1104 = vmatpush1.msra.mxu0 %v3265_v3 }
 0x5e7   :  { %1105 = vmatprep.subr.mxu0 %v1098_v61 }
 0x5e8   :  { %1106 = vmatpush1.msra.mxu0 %v3272_v24 }
 0x5e9   :  { %1107 = vmatprep.subr.mxu0 %v1097_v1 }
 0x5ea   :  { %1108 = vmatpush1.msra.mxu0 %v3277_v60 }
 0x5eb   :  { %1109 = vmatprep.subr.mxu0 %v1096_v8  ;;  %v1084_v8 = vld [vmem:[%s3720_s3 + $0xb] sm:$0x1] }
 0x5ec   :  { %1110 = vmatpush1.msra.mxu0 %v3282_v58 }
 0x5ed   :  { %1111 = vmatprep.subr.mxu0 %v1095_v12 }
 0x5ee   :  { %1112 = vmatpush1.msra.mxu0 %v3288_v17 }
 0x5ef   :  { %1113 = vmatprep.subr.mxu0 %v1094_v14 }
 0x5f0   :  { %1114 = vmatpush1.msra.mxu0 %v3295_v4 }
 0x5f1   :  { %1115 = vmatprep.subr.mxu0 %v1093_v20 }
 0x5f2   :  { %1116 = vmatpush1.msra.mxu0 %v3301_v30 }
 0x5f3   :  { %1117 = vmatprep.subr.mxu0 %v1092_v38 }
 0x5f4   :  { %1118 = vmatpush1.msra.mxu0 %v3306_v28 }
 0x5f5   :  { %1119 = vmatprep.subr.mxu0 %v1091_v45 }
 0x5f6   :  { %1120 = vmatpush1.msra.mxu0 %v3312_v11 }
 0x5f7   :  { %1121 = vmatprep.subr.mxu0 %v1090_v35 }
 0x5f8   :  { %1122 = vmatpush1.msra.mxu0 %v3319_v42 }
 0x5f9   :  { %1123 = vmatprep.subr.mxu0 %v1089_v13 }
 0x5fa   :  { %1124 = vmatpush1.msra.mxu0 %v3326_v41 }
 0x5fb   :  { %1125 = vmatprep.subr.mxu0 %v1088_v44 }
 0x5fc   :  { %1126 = vmatpush1.msra.mxu0 %v3331_v47 }
 0x5fd   :  { %1127 = vmatprep.subr.mxu0 %v1087_v50 }
 0x5fe   :  { %1128 = vmatpush1.msra.mxu0 %v3338_v37 }
 0x5ff   :  { %1129 = vmatprep.subr.mxu0 %v1086_v46 }
 0x600   :  { %1130 = vmatpush1.msra.mxu0 %v1068_v39 }
 0x601   :  { %1131 = vmatprep.subr.mxu0 %v1085_v51 }
 0x602   :  { %1132 = vmatpush1.msra.mxu0 %v1067_v48 }
 0x603   :  { %1166 = vmatmul.mubr.f32.vlgmr.msra.gmra.mxu0 %v2809_v49 }
 0x604   :  { %2647 = vmatprep.mubr.bf16.mxu0 %v3051_v19  ;;  %v2777_v19 = vld [vmem:[%s3719_s4 + $0xa0] sm:$0xff]  }
 0x605   :  { %2605 = vmatprep.subr.bf16.mxu1 %v2777_v19 }
 0x606   :  { %2606 = vmatpush3.bf16.msra.mxu1 %v2777_v19 }
 0x607   :  { %2607 = vmatprep.subr.bf16.mxu1 %v2778_v53 }
 0x60a   :  { %2608 = vmatpush3.bf16.msra.mxu1 %v2778_v53 }
 0x60b   :  { %2609 = vmatprep.subr.bf16.mxu1 %v2779_v9 }
 0x60e   :  { %2610 = vmatpush3.bf16.msra.mxu1 %v2779_v9 }
 0x60f   :  { %2611 = vmatprep.subr.bf16.mxu1 %v2780_v5 }
 0x612   :  { %2612 = vmatpush3.bf16.msra.mxu1 %v2780_v5 }
 0x613   :  { %2613 = vmatprep.subr.bf16.mxu1 %v2781_v54 }
 0x616   :  { %2614 = vmatpush3.bf16.msra.mxu1 %v2781_v54 }
 0x6c3   :  { %v1167_v55 = vpop.f32.mrf.mxu0 }
 0x6c4   :  { %v1172_v57 = vmul.f32 0.0078125, %v1167_v55 }
 0x6c5   :  { %v1169_v26 = vpop.f32.mrf.mxu0 }
 0x6c6   :  { %v1174_v59 = vmul.f32 %v1172_v57, %v1172_v57  ;;  %v1173_v18 = vmul.f32 0.0078125, %v1169_v26 }
 0x6c8   :  { %v1175_v22 = vsub.f32 %v1173_v18, %v1174_v59 }
 0x6ca   :  { %v1176_v56 = vmax.f32 %v1175_v22, 0.0 }
 0x6cc   :  { %v1177_v61 = vadd.f32 1e-05, %v1176_v56 }
 0x6ce   :  { %2794 = vrsqrt.f32 %v1177_v61 }
 0x6db   :  { %v2795_v1 = vpop.eup %2794 }
 0x6dc   :  { %v1179_v2 = vmul.f32 %v2795_v1, %v1083_v62 }
 0x6de   :  { %v1180_v10 = vmul.f32 %v1179_v2, %v1172_v57  ;;  %v1185_v12 = vrot.slane %v1179_v2, %v3025_v6 }
 0x6e0   :  { %v1181_v7 = vsub.f32 %v1084_v8, %v1180_v10  ;;  %v1186_v14 = vmul.f32 %v1185_v12, %v1067_v48  ;;  %v1187_v20 = vmul.f32 %v1185_v12, %v1068_v39  ;;  %v1188_v43 = vmul.f32 %v1185_v12, %v3338_v37 }
 0x6e1   :  { %v1189_v38 = vmul.f32 %v1185_v12, %v3331_v47  ;;  %v1190_v36 = vmul.f32 %v1185_v12, %v3326_v41  ;;  %v1191_v45 = vmul.f32 %v1185_v12, %v3319_v42  ;;  %v1192_v39 = vmul.f32 %v1185_v12, %v3312_v11 }
 0x6e2   :  { %v1205_v15 = vrot.slane %v1181_v7, %v3025_v6  ;;  %v1193_v37 = vmul.f32 %v1185_v12, %v3306_v28  ;;  %v1194_v41 = vmul.f32 %v1185_v12, %v3301_v30  ;;  %v1195_v42 = vmul.f32 %v1185_v12, %v3295_v4 }
 0x6e3   :  { %v1196_v9 = vmul.f32 %v1185_v12, %v3288_v17  ;;  %v1197_v5 = vmul.f32 %v1185_v12, %v3282_v58  ;;  %v1198_v11 = vmul.f32 %v1185_v12, %v3277_v60  ;;  %v1199_v28 = vmul.f32 %v1185_v12, %v3272_v24 }
 0x6e4   :  { %v1206_v40 = vadd.f32 %v1205_v15, %v1186_v14  ;;  %v1207_v35 = vadd.f32 %v1205_v15, %v1187_v20  ;;  %v1208_v16 = vadd.f32 %v1205_v15, %v1188_v43  ;;  %v1209_v13 = vadd.f32 %v1205_v15, %v1189_v38 }
 0x6e5   :  { %v1210_v44 = vadd.f32 %v1205_v15, %v1190_v36  ;;  %v1211_v50 = vadd.f32 %v1205_v15, %v1191_v45  ;;  %v1212_v47 = vadd.f32 %v1205_v15, %v1192_v39  ;;  %v1213_v34 = vadd.f32 %v1205_v15, %v1193_v37 }
 0x6e6   :  { %v1254_v46 = vpack.c.bf16 %v1207_v35, %v1206_v40  ;;  %v1255_v51 = vpack.c.bf16 %v1209_v13, %v1208_v16  ;;  %v1214_v32 = vadd.f32 %v1205_v15, %v1194_v41  ;;  %v1215_v52 = vadd.f32 %v1205_v15, %v1195_v42 }
 0x6e7   :  { %v1256_v48 = vpack.c.bf16 %v1211_v50, %v1210_v44  ;;  %v1257_v19 = vpack.c.bf16 %v1213_v34, %v1212_v47  ;;  %v1216_v54 = vadd.f32 %v1205_v15, %v1196_v9  ;;  %v1217_v30 = vadd.f32 %v1205_v15, %v1197_v5 }
 0x6e8   :  { %2615 = vmatprep.mubr.bf16.mxu1 %v1254_v46  ;;  %v1258_v53 = vpack.c.bf16 %v1215_v52, %v1214_v32  ;;  %v1218_v55 = vadd.f32 %v1205_v15, %v1198_v11  ;;  %v1219_v4 = vadd.f32 %v1205_v15, %v1199_v28  ;;  %v1200_v59 = vmul.f32 %v1185_v12, %v3265_v3 }
 0x6e9   :  { %2616 = vmatmul.mubr.bf16.vlgmr.msra.gmra.mxu1 %v1255_v51  ;;  %v1259_v57 = vpack.c.bf16 %v1217_v30, %v1216_v54  ;;  %v1201_v18 = vmul.f32 %v1185_v12, %v3268_v63 }
 0x6ea   :  { %2619 = vmatprep.mubr.bf16.mxu1 %v1256_v48  ;;  %v1260_v26 = vpack.c.bf16 %v1219_v4, %v1218_v55  ;;  %v1220_v17 = vadd.f32 %v1205_v15, %v1200_v59 }
 0x6eb   :  { %v1221_v22 = vadd.f32 %v1205_v15, %v1201_v18 }
 0x6ed   :  { %v1261_v58 = vpack.c.bf16 %v1221_v22, %v1220_v17 }
 0x6f1   :  { %2620 = vmatmul.mubr.bf16.gmra.mxu1 %v1257_v19 }
 0x6f2   :  { %2623 = vmatprep.mubr.bf16.mxu1 %v1258_v53 }
 0x6f9   :  { %2624 = vmatmul.mubr.bf16.gmra.mxu1 %v1259_v57 }
 0x6fa   :  { %2627 = vmatprep.mubr.bf16.mxu1 %v1260_v26 }
 0x701   :  { %2628 = vmatmul.mubr.bf16.gmra.mxu1 %v1261_v58 }
 0x702   :  { %1632 = vmatprep.mubr.f32.mxu1 %v2808_v0 }
 0x7a9   :  { %v2617_v60 = vpop.f32.mrf.mxu1 }
 0x7ab   :  { %v1361_v24 = vpop.f32.mrf.mxu1 }
 0x7ad   :  { %v2618_v56 = vpop.f32.mrf.mxu1 }
 0x7ae   :  { %v1425_v16 = vpack.c.bf16 %v2618_v56, %v2617_v60 }
 0x7af   :  { %v1364_v61 = vpop.f32.mrf.mxu1 }
 0x7b0   :  { %v1424_v13 = vpack.c.bf16 %v1364_v61, %v1361_v24 }
 0x7b1   :  { %v2621_v62 = vpop.f32.mrf.mxu1 }
 0x7b3   :  { %v1377_v1 = vpop.f32.mrf.mxu1 }
 0x7b5   :  { %v2622_v2 = vpop.f32.mrf.mxu1 }
 0x7b6   :  { %v1427_v40 = vpack.c.bf16 %v2622_v2, %v2621_v62 }
 0x7b7   :  { %v1380_v8 = vpop.f32.mrf.mxu1 }
 0x7b8   :  { %v1426_v35 = vpack.c.bf16 %v1380_v8, %v1377_v1 }
 0x7b9   :  { %v2625_v10 = vpop.f32.mrf.mxu1 }
 0x7bb   :  { %v1393_v7 = vpop.f32.mrf.mxu1 }
 0x7bd   :  { %v2626_v3 = vpop.f32.mrf.mxu1 }
 0x7be   :  { %v1429_v36 = vpack.c.bf16 %v2626_v3, %v2625_v10 }
 0x7bf   :  { %v1396_v14 = vpop.f32.mrf.mxu1 }
 0x7c0   :  { %v1428_v45 = vpack.c.bf16 %v1396_v14, %v1393_v7 }
 0x7c1   :  { %v2629_v63 = vpop.f32.mrf.mxu1 }
 0x7c3   :  { %v1409_v12 = vpop.f32.mrf.mxu1 }
 0x7c5   :  { %v2630_v20 = vpop.f32.mrf.mxu1 }
 0x7c6   :  { %v1431_v15 = vpack.c.bf16 %v2630_v20, %v2629_v63 }
 0x7c7   :  { %v1412_v43 = vpop.f32.mrf.mxu1 }
 0x7c8   :  { %v1430_v38 = vpack.c.bf16 %v1412_v43, %v1409_v12  ;;  %2631 = vmatprep.subr.bf16.mxu0 %v1431_v15 }
 0x7c9   :  { %2632 = vmatpush3.bf16.msra.mxu0 %v1431_v15 }
 0x7ca   :  { %2633 = vmatprep.subr.bf16.mxu0 %v1430_v38 }
 0x7cd   :  { %2634 = vmatpush3.bf16.msra.mxu0 %v1430_v38 }
 0x7ce   :  { %2635 = vmatprep.subr.bf16.mxu0 %v1429_v36 }
 0x7d1   :  { %2636 = vmatpush3.bf16.msra.mxu0 %v1429_v36 }
 0x7d2   :  { %2637 = vmatprep.subr.bf16.mxu0 %v1428_v45 }
 0x7d5   :  { %2638 = vmatpush3.bf16.msra.mxu0 %v1428_v45 }
 0x7d6   :  { %2639 = vmatprep.subr.bf16.mxu0 %v1427_v40 }
 0x7d9   :  { %2640 = vmatpush3.bf16.msra.mxu0 %v1427_v40 }
 0x7da   :  { %2641 = vmatprep.subr.bf16.mxu0 %v1426_v35 }
 0x7dd   :  { %2642 = vmatpush3.bf16.msra.mxu0 %v1426_v35 }
 0x7de   :  { %2643 = vmatprep.subr.bf16.mxu0 %v1425_v16 }
 0x7e1   :  { %2644 = vmatpush3.bf16.msra.mxu0 %v1425_v16 }
 0x7e2   :  { %2645 = vmatprep.subr.bf16.mxu0 %v1424_v13 }
 0x7e5   :  { %2646 = vmatpush3.bf16.msra.mxu0 %v1424_v13 }
 0x7e8   :  { %2648 = vmatmul.mubr.bf16.vlgmr.msra.gmra.mxu0 %v3057_v21 }
 0x7e9   :  { %2651 = vmatprep.mubr.bf16.mxu0 %v3062_v23 }
 0x7f0   :  { %2652 = vmatmul.mubr.bf16.gmra.mxu0 %v3069_v25 }
 0x7f1   :  { %2655 = vmatprep.mubr.bf16.mxu0 %v3074_v27 }
 0x7f8   :  { %2656 = vmatmul.mubr.bf16.gmra.mxu0 %v3081_v29 }
 0x7f9   :  { %2659 = vmatprep.mubr.bf16.mxu0 %v3086_v31  ;;  %v3417_v31 = vld [vmem:[%s3720_s3 + $0x4] ss:$0 sm:$0xff] }
 0x800   :  { %2660 = vmatmul.mubr.bf16.gmra.mxu0 %v3093_v33 }
 0x8a8   :  { %v3408_v44 = vpop.f32.mrf.mxu0 }
 0x8a9   :  { %v1480_v12 = vadd.f32 %v3408_v44, %v3417_v31 }
 0x8aa   :  { %v3410_v50 = vpop.f32.mrf.mxu0 }
 0x8ab   :  { %v3494_v45 = vmax.f32 %v1480_v12, 0.0  ;;  %v1472_v40 = vadd.f32 %v3417_v31, %v3410_v50 }
 0x8ac   :  { %v2650_v46 = vpop.f32.mrf.mxu0 }
 0x8ad   :  { %v1483_v3 = vadd.f32 %v2650_v46, %v3417_v31  ;;  %v1534_v44 = vmax.f32 %v1472_v40, 0.0  ;;  %v1554_v46 = vmul.f32 %v3494_v45, %v3494_v45 }
 0x8ae   :  { %v3412_v51 = vpop.f32.mrf.mxu0 }
 0x8af   :  { %v3487_v43 = vmax.f32 %v1483_v3, 0.0  ;;  %v1475_v38 = vadd.f32 %v3417_v31, %v3412_v51  ;;  %v1552_v51 = vmul.f32 %v1534_v44, %v1534_v44 }
 0x8b0   :  { %v2653_v21 = vpop.f32.mrf.mxu0 }
 0x8b1   :  { %v1496_v24 = vadd.f32 %v2653_v21, %v3417_v31  ;;  %v1535_v16 = vmax.f32 %v1475_v38, 0.0  ;;  %v1555_v13 = vmul.f32 %v3487_v43, %v3487_v43  ;;  %v2800_v21 = vld [vmem:[%s3721_s0] sm:$0xff]  }
 0x8b2   :  { %v1487_v48 = vpop.f32.mrf.mxu0 }
 0x8b3   :  { %v3468_v8 = vmax.f32 %v1496_v24, 0.0  ;;  %v1488_v10 = vadd.f32 %v3417_v31, %v1487_v48  ;;  %v1553_v50 = vmul.f32 %v1535_v16, %v1535_v16  ;;  %v2782_v48 = vld [vmem:[%s3719_s4 + $0xf8] sm:$0xff]  }
 0x8b4   :  { %v2654_v23 = vpop.f32.mrf.mxu0  ;;  %2663 = vmatprep.subr.bf16.mxu0 %v2782_v48 }
 0x8b5   :  { %v1499_v22 = vadd.f32 %v2654_v23, %v3417_v31  ;;  %v3482_v20 = vmax.f32 %v1488_v10, 0.0  ;;  %v1558_v15 = vmul.f32 %v3468_v8, %v3468_v8  ;;  %2664 = vmatpush3.bf16.msra.mxu0 %v2782_v48  ;;  %v2783_v23 = vld [vmem:[%s3719_s4 + $0xf0] sm:$0xff]  }
 0x8b6   :  { %v1490_v39 = vpop.f32.mrf.mxu0  ;;  %2665 = vmatprep.subr.bf16.mxu0 %v2783_v23 }
 0x8b7   :  { %v3462_v62 = vmax.f32 %v1499_v22, 0.0  ;;  %v1491_v1 = vadd.f32 %v3417_v31, %v1490_v39  ;;  %v1556_v35 = vmul.f32 %v3482_v20, %v3482_v20  ;;  %v2784_v39 = vld [vmem:[%s3719_s4 + $0xe8] sm:$0xff]  }
 0x8b8   :  { %v2657_v25 = vpop.f32.mrf.mxu0 }
 0x8b9   :  { %v1512_v54 = vadd.f32 %v2657_v25, %v3417_v31  ;;  %v3475_v14 = vmax.f32 %v1491_v1, 0.0  ;;  %v1559_v63 = vmul.f32 %v3462_v62, %v3462_v62  ;;  %2666 = vmatpush3.bf16.msra.mxu0 %v2783_v23  ;;  %v2785_v25 = vld [vmem:[%s3719_s4 + $0xe0] sm:$0xff]  }
 0x8ba   :  { %v1503_v37 = vpop.f32.mrf.mxu0  ;;  %2667 = vmatprep.subr.bf16.mxu0 %v2784_v39 }
 0x8bb   :  { %v3444_v59 = vmax.f32 %v1512_v54, 0.0  ;;  %v1504_v18 = vadd.f32 %v3417_v31, %v1503_v37  ;;  %v1557_v36 = vmul.f32 %v3475_v14, %v3475_v14  ;;  %v2786_v37 = vld [vmem:[%s3719_s4 + $0xd8] sm:$0xff]  }
 0x8bc   :  { %v2658_v27 = vpop.f32.mrf.mxu0 }
 0x8bd   :  { %v1515_v5 = vadd.f32 %v2658_v27, %v3417_v31  ;;  %v3457_v56 = vmax.f32 %v1504_v18, 0.0  ;;  %v1562_v61 = vmul.f32 %v3444_v59, %v3444_v59  ;;  %2668 = vmatpush3.bf16.msra.mxu0 %v2784_v39  ;;  %v2787_v27 = vld [vmem:[%s3719_s4 + $0xd0] sm:$0xff]  }
 0x8be   :  { %v1506_v41 = vpop.f32.mrf.mxu0  ;;  %2669 = vmatprep.subr.bf16.mxu0 %v2785_v25 }
 0x8bf   :  { %v3438_v4 = vmax.f32 %v1515_v5, 0.0  ;;  %v1507_v57 = vadd.f32 %v3417_v31, %v1506_v41  ;;  %v1560_v7 = vmul.f32 %v3457_v56, %v3457_v56  ;;  %v2788_v41 = vld [vmem:[%s3719_s4 + $0xc8] sm:$0xff]  }
 0x8c0   :  { %v2661_v29 = vpop.f32.mrf.mxu0  ;;  %v1550_v5 = vld [vmem:[%s3720_s3 + $0x8] sm:$0x1] }
 0x8c1   :  { %v1528_v42 = vadd.f32 %v2661_v29, %v3417_v31  ;;  %v3451_v58 = vmax.f32 %v1507_v57, 0.0  ;;  %v1563_v60 = vmul.f32 %v3438_v4, %v3438_v4  ;;  %2670 = vmatpush3.bf16.msra.mxu0 %v2785_v25  ;;  %v2789_v29 = vld [vmem:[%s3719_s4 + $0xc0] sm:$0xff]  }
 0x8c2   :  { %v1519_v33 = vpop.f32.mrf.mxu0  ;;  %2671 = vmatprep.subr.bf16.mxu0 %v2786_v37 }
 0x8c3   :  { %v3421_v52 = vmax.f32 %v1528_v42, 0.0  ;;  %v1520_v19 = vadd.f32 %v3417_v31, %v1519_v33  ;;  %v1561_v2 = vmul.f32 %v3451_v58, %v3451_v58 }
 0x8c4   :  { %v2662_v47 = vpop.f32.mrf.mxu0 }
 0x8c5   :  { %v1531_v34 = vadd.f32 %v2662_v47, %v3417_v31  ;;  %v3433_v30 = vmax.f32 %v1520_v19, 0.0  ;;  %v1566_v55 = vmul.f32 %v3421_v52, %v3421_v52  ;;  %2672 = vmatpush3.bf16.msra.mxu0 %v2786_v37 }
 0x8c6   :  { %v1522_v32 = vpop.f32.mrf.mxu0  ;;  %2673 = vmatprep.subr.bf16.mxu0 %v2787_v27 }
 0x8c7   :  { %v3424_v53 = vmax.f32 %v1531_v34, 0.0  ;;  %v1523_v9 = vadd.f32 %v3417_v31, %v1522_v32  ;;  %v1564_v17 = vmul.f32 %v3433_v30, %v3433_v30 }
 0x8c9   :  { %v3428_v11 = vmax.f32 %v1523_v9, 0.0  ;;  %v1567_v28 = vmul.f32 %v3424_v53, %v3424_v53  ;;  %2674 = vmatpush3.bf16.msra.mxu0 %v2787_v27 }
 0x8ca   :  { %2675 = vmatprep.subr.bf16.mxu0 %v2788_v41 }
 0x8cb   :  { %1568 = vmatprep.subr.mxu1 %v1567_v28  ;;  %v1565_v26 = vmul.f32 %v3428_v11, %v3428_v11 }
 0x8cc   :  { %1569 = vmatpush1.msra.mxu1 %v3424_v53 }
 0x8cd   :  { %1570 = vmatprep.subr.mxu1 %v1566_v55  ;;  %2676 = vmatpush3.bf16.msra.mxu0 %v2788_v41  ;;  %v1551_v55 = vld [vmem:[%s3720_s3 + $0xc] sm:$0x1] }
 0x8ce   :  { %1571 = vmatpush1.msra.mxu1 %v3421_v52  ;;  %2677 = vmatprep.subr.bf16.mxu0 %v2789_v29 }
 0x8cf   :  { %1572 = vmatprep.subr.mxu1 %v1565_v26 }
 0x8d0   :  { %1573 = vmatpush1.msra.mxu1 %v3428_v11 }
 0x8d1   :  { %1574 = vmatprep.subr.mxu1 %v1564_v17  ;;  %2678 = vmatpush3.bf16.msra.mxu0 %v2789_v29 }
 0x8d2   :  { %1575 = vmatpush1.msra.mxu1 %v3433_v30 }
 0x8d3   :  { %1576 = vmatprep.subr.mxu1 %v1563_v60 }
 0x8d4   :  { %1577 = vmatpush1.msra.mxu1 %v3438_v4 }
 0x8d5   :  { %1578 = vmatprep.subr.mxu1 %v1562_v61 }
 0x8d6   :  { %1579 = vmatpush1.msra.mxu1 %v3444_v59 }
 0x8d7   :  { %1580 = vmatprep.subr.mxu1 %v1561_v2 }
 0x8d8   :  { %1581 = vmatpush1.msra.mxu1 %v3451_v58 }
 0x8d9   :  { %1582 = vmatprep.subr.mxu1 %v1560_v7 }
 0x8da   :  { %1583 = vmatpush1.msra.mxu1 %v3457_v56 }
 0x8db   :  { %1584 = vmatprep.subr.mxu1 %v1559_v63 }
 0x8dc   :  { %1585 = vmatpush1.msra.mxu1 %v3462_v62 }
 0x8dd   :  { %1586 = vmatprep.subr.mxu1 %v1558_v15 }
 0x8de   :  { %1587 = vmatpush1.msra.mxu1 %v3468_v8 }
 0x8df   :  { %1588 = vmatprep.subr.mxu1 %v1557_v36 }
 0x8e0   :  { %1589 = vmatpush1.msra.mxu1 %v3475_v14 }
 0x8e1   :  { %1590 = vmatprep.subr.mxu1 %v1556_v35 }
 0x8e2   :  { %1591 = vmatpush1.msra.mxu1 %v3482_v20 }
 0x8e3   :  { %1592 = vmatprep.subr.mxu1 %v1555_v13 }
 0x8e4   :  { %1593 = vmatpush1.msra.mxu1 %v3487_v43 }
 0x8e5   :  { %1594 = vmatprep.subr.mxu1 %v1554_v46 }
 0x8e6   :  { %1595 = vmatpush1.msra.mxu1 %v3494_v45 }
 0x8e7   :  { %1596 = vmatprep.subr.mxu1 %v1553_v50 }
 0x8e8   :  { %1597 = vmatpush1.msra.mxu1 %v1535_v16 }
 0x8e9   :  { %1598 = vmatprep.subr.mxu1 %v1552_v51 }
 0x8ea   :  { %1599 = vmatpush1.msra.mxu1 %v1534_v44 }
 0x8eb   :  { %1633 = vmatmul.mubr.f32.vlgmr.msra.gmra.mxu1 %v2809_v49 }
 0x8ec   :  { %2711 = vmatprep.mubr.bf16.mxu1 %v2800_v21 }
 0x9ab   :  { %v1634_v31 = vpop.f32.mrf.mxu1 }
 0x9ac   :  { %v1639_v33 = vmul.f32 0.0078125, %v1634_v31 }
 0x9ad   :  { %v1636_v42 = vpop.f32.mrf.mxu1 }
 0x9ae   :  { %v1641_v47 = vmul.f32 %v1639_v33, %v1639_v33  ;;  %v1640_v34 = vmul.f32 0.0078125, %v1636_v42 }
 0x9b0   :  { %v1642_v32 = vsub.f32 %v1640_v34, %v1641_v47 }
 0x9b2   :  { %v1643_v19 = vmax.f32 %v1642_v32, 0.0 }
 0x9b4   :  { %v1644_v9 = vadd.f32 1e-05, %v1643_v19 }
 0x9b6   :  { %2796 = vrsqrt.f32 %v1644_v9 }
 0x9c3   :  { %v2797_v28 = vpop.eup %2796 }
 0x9c4   :  { %v1646_v54 = vmul.f32 %v2797_v28, %v1550_v5 }
 0x9c6   :  { %v1647_v57 = vmul.f32 %v1646_v54, %v1639_v33  ;;  %v1652_v26 = vrot.slane %v1646_v54, %v3025_v6 }
 0x9c8   :  { %v1648_v18 = vsub.f32 %v1551_v55, %v1647_v57  ;;  %v1653_v17 = vmul.f32 %v1652_v26, %v1534_v44  ;;  %v1654_v60 = vmul.f32 %v1652_v26, %v1535_v16  ;;  %v1655_v24 = vmul.f32 %v1652_v26, %v3494_v45 }
 0x9c9   :  { %v1656_v61 = vmul.f32 %v1652_v26, %v3487_v43  ;;  %v1657_v1 = vmul.f32 %v1652_v26, %v3482_v20  ;;  %v1658_v2 = vmul.f32 %v1652_v26, %v3475_v14  ;;  %v1659_v35 = vmul.f32 %v1652_v26, %v3468_v8 }
 0x9ca   :  { %v1672_v22 = vrot.slane %v1648_v18, %v3025_v6  ;;  %v1660_v45 = vmul.f32 %v1652_v26, %v3462_v62  ;;  %v1661_v20 = vmul.f32 %v1652_v26, %v3457_v56  ;;  %v1662_v14 = vmul.f32 %v1652_v26, %v3451_v58 }
 0x9cb   :  { %v1663_v51 = vmul.f32 %v1652_v26, %v3444_v59  ;;  %v1664_v21 = vmul.f32 %v1652_v26, %v3438_v4  ;;  %v1665_v8 = vmul.f32 %v1652_v26, %v3433_v30  ;;  %v1666_v62 = vmul.f32 %v1652_v26, %v3428_v11 }
 0x9cc   :  { %v1673_v10 = vadd.f32 %v1672_v22, %v1653_v17  ;;  %v1674_v7 = vadd.f32 %v1672_v22, %v1654_v60  ;;  %v1675_v3 = vadd.f32 %v1672_v22, %v1655_v24  ;;  %v1676_v63 = vadd.f32 %v1672_v22, %v1656_v61  ;;  %v2801_v61 = vld [vmem:[%s3721_s0 + $0x8] sm:$0xff]  }
 0x9cd   :  { %v1677_v12 = vadd.f32 %v1672_v22, %v1657_v1  ;;  %v1678_v15 = vadd.f32 %v1672_v22, %v1658_v2  ;;  %v1679_v43 = vadd.f32 %v1672_v22, %v1659_v35  ;;  %v1680_v16 = vadd.f32 %v1672_v22, %v1660_v45  ;;  %v2802_v1 = vld [vmem:[%s3721_s0 + $0x10] sm:$0xff]   ;;  %v2803_v2 = vld [vmem:[%s3721_s0 + $0x18] sm:$0xff]  }
 0x9ce   :  { %v1721_v38 = vpack.c.bf16 %v1674_v7, %v1673_v10  ;;  %v1722_v36 = vpack.c.bf16 %v1676_v63, %v1675_v3  ;;  %v1681_v13 = vadd.f32 %v1672_v22, %v1661_v20  ;;  %v1682_v44 = vadd.f32 %v1672_v22, %v1662_v14  ;;  %v2804_v10 = vld [vmem:[%s3721_s0 + $0x20] sm:$0xff]   ;;  %v2805_v7 = vld [vmem:[%s3721_s0 + $0x28] sm:$0xff]   ;;  %v2806_v3 = vld [vmem:[%s3721_s0 + $0x30] sm:$0xff]  }
 0x9cf   :  { %v1723_v40 = vpack.c.bf16 %v1678_v15, %v1677_v12  ;;  %v1724_v46 = vpack.c.bf16 %v1680_v16, %v1679_v43  ;;  %v1683_v48 = vadd.f32 %v1672_v22, %v1663_v51  ;;  %v1684_v56 = vadd.f32 %v1672_v22, %v1664_v21  ;;  %v2807_v63 = vld [vmem:[%s3721_s0 + $0x38] sm:$0xff]  }
 0x9d0   :  { %2679 = vmatprep.mubr.bf16.mxu0 %v1721_v38  ;;  %v1725_v50 = vpack.c.bf16 %v1682_v44, %v1681_v13  ;;  %v1685_v23 = vadd.f32 %v1672_v22, %v1665_v8  ;;  %v1686_v58 = vadd.f32 %v1672_v22, %v1666_v62  ;;  %v1667_v37 = vmul.f32 %v1652_v26, %v3421_v52 }
 0x9d1   :  { %2680 = vmatmul.mubr.bf16.vlgmr.msra.gmra.mxu0 %v1722_v36  ;;  %v1726_v39 = vpack.c.bf16 %v1684_v56, %v1683_v48  ;;  %v1668_v27 = vmul.f32 %v1652_v26, %v3424_v53 }
 0x9d2   :  { %2683 = vmatprep.mubr.bf16.mxu0 %v1723_v40  ;;  %v1727_v25 = vpack.c.bf16 %v1686_v58, %v1685_v23  ;;  %v1687_v59 = vadd.f32 %v1672_v22, %v1667_v37 }
 0x9d3   :  { %v1688_v41 = vadd.f32 %v1672_v22, %v1668_v27 }
 0x9d5   :  { %v1728_v4 = vpack.c.bf16 %v1688_v41, %v1687_v59 }
 0x9d9   :  { %2684 = vmatmul.mubr.bf16.gmra.mxu0 %v1724_v46  ;;  %v3590_v46 = vld [vmem:[%s3720_s3 + $0x5] ss:$0 sm:$0xff] }
 0x9da   :  { %2687 = vmatprep.mubr.bf16.mxu0 %v1725_v50 }
 0x9e1   :  { %2688 = vmatmul.mubr.bf16.gmra.mxu0 %v1726_v39 }
 0x9e2   :  { %2691 = vmatprep.mubr.bf16.mxu0 %v1727_v25 }
 0x9e9   :  { %2692 = vmatmul.mubr.bf16.gmra.mxu0 %v1728_v4 }
 0x9ea   :  { %2099 = vmatprep.mubr.f32.mxu0 %v2808_v0 }
 0xa91   :  { %v2681_v30 = vpop.f32.mrf.mxu0 }
 0xa93   :  { %v1828_v11 = vpop.f32.mrf.mxu0 }
 0xa95   :  { %v2682_v29 = vpop.f32.mrf.mxu0 }
 0xa96   :  { %v1892_v60 = vpack.c.bf16 %v2682_v29, %v2681_v30 }
 0xa97   :  { %v1831_v31 = vpop.f32.mrf.mxu0 }
 0xa98   :  { %v1891_v24 = vpack.c.bf16 %v1831_v31, %v1828_v11 }
 0xa99   :  { %v2685_v33 = vpop.f32.mrf.mxu0 }
 0xa9b   :  { %v1844_v42 = vpop.f32.mrf.mxu0 }
 0xa9d   :  { %v2686_v47 = vpop.f32.mrf.mxu0 }
 0xa9e   :  { %v1894_v17 = vpack.c.bf16 %v2686_v47, %v2685_v33 }
 0xa9f   :  { %v1847_v34 = vpop.f32.mrf.mxu0 }
 0xaa0   :  { %v1893_v22 = vpack.c.bf16 %v1847_v34, %v1844_v42 }
 0xaa1   :  { %v2689_v32 = vpop.f32.mrf.mxu0 }
 0xaa3   :  { %v1860_v19 = vpop.f32.mrf.mxu0 }
 0xaa5   :  { %v2690_v52 = vpop.f32.mrf.mxu0 }
 0xaa6   :  { %v1896_v26 = vpack.c.bf16 %v2690_v52, %v2689_v32 }
 0xaa7   :  { %v1863_v9 = vpop.f32.mrf.mxu0 }
 0xaa8   :  { %v1895_v18 = vpack.c.bf16 %v1863_v9, %v1860_v19 }
 0xaa9   :  { %v2693_v53 = vpop.f32.mrf.mxu0 }
 0xaab   :  { %v1876_v5 = vpop.f32.mrf.mxu0 }
 0xaad   :  { %v2694_v28 = vpop.f32.mrf.mxu0 }
 0xaae   :  { %v1898_v54 = vpack.c.bf16 %v2694_v28, %v2693_v53 }
 0xaaf   :  { %v1879_v55 = vpop.f32.mrf.mxu0 }
 0xab0   :  { %v1897_v57 = vpack.c.bf16 %v1879_v55, %v1876_v5  ;;  %2695 = vmatprep.subr.bf16.mxu1 %v1898_v54 }
 0xab1   :  { %2696 = vmatpush3.bf16.msra.mxu1 %v1898_v54 }
 0xab2   :  { %2697 = vmatprep.subr.bf16.mxu1 %v1897_v57 }
 0xab5   :  { %2698 = vmatpush3.bf16.msra.mxu1 %v1897_v57 }
 0xab6   :  { %2699 = vmatprep.subr.bf16.mxu1 %v1896_v26 }
 0xab9   :  { %2700 = vmatpush3.bf16.msra.mxu1 %v1896_v26 }
 0xaba   :  { %2701 = vmatprep.subr.bf16.mxu1 %v1895_v18 }
 0xabd   :  { %2702 = vmatpush3.bf16.msra.mxu1 %v1895_v18 }
 0xabe   :  { %2703 = vmatprep.subr.bf16.mxu1 %v1894_v17 }
 0xac1   :  { %2704 = vmatpush3.bf16.msra.mxu1 %v1894_v17 }
 0xac2   :  { %2705 = vmatprep.subr.bf16.mxu1 %v1893_v22 }
 0xac5   :  { %2706 = vmatpush3.bf16.msra.mxu1 %v1893_v22 }
 0xac6   :  { %2707 = vmatprep.subr.bf16.mxu1 %v1892_v60 }
 0xac9   :  { %2708 = vmatpush3.bf16.msra.mxu1 %v1892_v60 }
 0xaca   :  { %2709 = vmatprep.subr.bf16.mxu1 %v1891_v24 }
 0xacd   :  { %2710 = vmatpush3.bf16.msra.mxu1 %v1891_v24 }
 0xace   :  { %2727 = vmatprep.subr.bf16.mxu1 %v2808_v0 }
 0xad0   :  { %2712 = vmatmul.mubr.bf16.vlgmr.msra.gmra.mxu1 %v2801_v61 }
 0xad1   :  { %2715 = vmatprep.mubr.bf16.mxu1 %v2802_v1 }
 0xad8   :  { %2716 = vmatmul.mubr.bf16.gmra.mxu1 %v2803_v2 }
 0xad9   :  { %2719 = vmatprep.mubr.bf16.mxu1 %v2804_v10 }
 0xae0   :  { %2720 = vmatmul.mubr.bf16.gmra.mxu1 %v2805_v7 }
 0xae1   :  { %2723 = vmatprep.mubr.bf16.mxu1 %v2806_v3 }
 0xae8   :  { %2724 = vmatmul.mubr.bf16.gmra.mxu1 %v2807_v63 }
 0xae9   :  { %2743 = vmatprep.mubr.msk.bf16.mxu1 %vm2810_vm1, %v2808_v0 }
 0xb90   :  { %v3581_v12 = vpop.f32.mrf.mxu1 }
 0xb91   :  { %v1947_v17 = vadd.f32 %v3581_v12, %v3590_v46 }
 0xb92   :  { %v3583_v15 = vpop.f32.mrf.mxu1 }
 0xb93   :  { %v2003_v2 = vmax.f32 %v1947_v17, 0.0  ;;  %v1939_v10 = vadd.f32 %v3590_v46, %v3583_v15 }
 0xb94   :  { %v2714_v38 = vpop.f32.mrf.mxu1 }
 0xb95   :  { %v1950_v57 = vadd.f32 %v2714_v38, %v3590_v46  ;;  %v3672_v12 = vmax.f32 %v1939_v10, 0.0  ;;  %v2021_v38 = vmul.f32 %v2003_v2, %v2003_v2 }
 0xb96   :  { %v3585_v36 = vpop.f32.mrf.mxu1 }
 0xb97   :  { %v3658_v24 = vmax.f32 %v1950_v57, 0.0  ;;  %v1942_v61 = vadd.f32 %v3590_v46, %v3585_v36  ;;  %v2019_v36 = vmul.f32 %v3672_v12, %v3672_v12 }
 0xb98   :  { %v2717_v40 = vpop.f32.mrf.mxu1 }
 0xb99   :  { %v1963_v32 = vadd.f32 %v2717_v40, %v3590_v46  ;;  %v3668_v3 = vmax.f32 %v1942_v61, 0.0  ;;  %v2022_v63 = vmul.f32 %v3658_v24, %v3658_v24 }
 0xb9a   :  { %v1954_v35 = vpop.f32.mrf.mxu1 }
 0xb9b   :  { %v3641_v28 = vmax.f32 %v1963_v32, 0.0  ;;  %v1955_v54 = vadd.f32 %v3590_v46, %v1954_v35  ;;  %v2020_v15 = vmul.f32 %v3668_v3, %v3668_v3 }
 0xb9c   :  { %v2718_v45 = vpop.f32.mrf.mxu1 }
 0xb9d   :  { %v1966_v42 = vadd.f32 %v2718_v45, %v3590_v46  ;;  %v2005_v22 = vmax.f32 %v1955_v54, 0.0  ;;  %v2025_v60 = vmul.f32 %v3641_v28, %v3641_v28 }
 0xb9e   :  { %v1957_v20 = vpop.f32.mrf.mxu1 }
 0xb9f   :  { %v3635_v9 = vmax.f32 %v1966_v42, 0.0  ;;  %v1958_v53 = vadd.f32 %v3590_v46, %v1957_v20  ;;  %v2023_v7 = vmul.f32 %v2005_v22, %v2005_v22 }
 0xba0   :  { %v2721_v14 = vpop.f32.mrf.mxu1 }
 0xba1   :  { %v1979_v27 = vadd.f32 %v2721_v14, %v3590_v46  ;;  %v3648_v26 = vmax.f32 %v1958_v53, 0.0  ;;  %v2026_v18 = vmul.f32 %v3635_v9, %v3635_v9 }
 0xba2   :  { %v1970_v43 = vpop.f32.mrf.mxu1 }
 0xba3   :  { %v3617_v29 = vmax.f32 %v1979_v27, 0.0  ;;  %v1971_v31 = vadd.f32 %v3590_v46, %v1970_v43  ;;  %v2024_v1 = vmul.f32 %v3648_v26, %v3648_v26 }
 0xba4   :  { %v2722_v16 = vpop.f32.mrf.mxu1 }
 0xba5   :  { %v1982_v39 = vadd.f32 %v2722_v16, %v3590_v46  ;;  %v3630_v19 = vmax.f32 %v1971_v31, 0.0  ;;  %v2029_v52 = vmul.f32 %v3617_v29, %v3617_v29 }
 0xba6   :  { %v1973_v13 = vpop.f32.mrf.mxu1 }
 0xba7   :  { %v3611_v4 = vmax.f32 %v1982_v39, 0.0  ;;  %v1974_v30 = vadd.f32 %v3590_v46, %v1973_v13  ;;  %v2027_v55 = vmul.f32 %v3630_v19, %v3630_v19 }
 0xba8   :  { %v2725_v44 = vpop.f32.mrf.mxu1 }
 0xba9   :  { %v1995_v51 = vadd.f32 %v2725_v44, %v3590_v46  ;;  %v3624_v47 = vmax.f32 %v1974_v30, 0.0  ;;  %v2030_v34 = vmul.f32 %v3611_v4, %v3611_v4  ;;  %v2017_v44 = vld [vmem:[%s3720_s3 + $0x9] sm:$0x1] }
 0xbaa   :  { %v1986_v50 = vpop.f32.mrf.mxu1 }
 0xbab   :  { %v3594_v48 = vmax.f32 %v1995_v51, 0.0  ;;  %v1987_v56 = vadd.f32 %v3590_v46, %v1986_v50  ;;  %v2028_v5 = vmul.f32 %v3624_v47, %v3624_v47 }
 0xbac   :  { %v2726_v21 = vpop.f32.mrf.mxu1 }
 0xbad   :  { %v1998_v8 = vadd.f32 %v2726_v21, %v3590_v46  ;;  %v3606_v59 = vmax.f32 %v1987_v56, 0.0  ;;  %v2033_v41 = vmul.f32 %v3594_v48, %v3594_v48 }
 0xbae   :  { %v1989_v62 = vpop.f32.mrf.mxu1 }
 0xbaf   :  { %v3597_v23 = vmax.f32 %v1998_v8, 0.0  ;;  %v1990_v58 = vadd.f32 %v3590_v46, %v1989_v62  ;;  %v2031_v33 = vmul.f32 %v3606_v59, %v3606_v59 }
 0xbb1   :  { %v3601_v25 = vmax.f32 %v1990_v58, 0.0  ;;  %v2034_v37 = vmul.f32 %v3597_v23, %v3597_v23 }
 0xbb3   :  { %2035 = vmatprep.subr.mxu0 %v2034_v37  ;;  %v2032_v11 = vmul.f32 %v3601_v25, %v3601_v25 }
 0xbb4   :  { %2036 = vmatpush1.msra.mxu0 %v3597_v23 }
 0xbb5   :  { %2037 = vmatprep.subr.mxu0 %v2033_v41 }
 0xbb6   :  { %2038 = vmatpush1.msra.mxu0 %v3594_v48 }
 0xbb7   :  { %2039 = vmatprep.subr.mxu0 %v2032_v11 }
 0xbb8   :  { %2040 = vmatpush1.msra.mxu0 %v3601_v25 }
 0xbb9   :  { %2041 = vmatprep.subr.mxu0 %v2031_v33 }
 0xbba   :  { %2042 = vmatpush1.msra.mxu0 %v3606_v59 }
 0xbbb   :  { %2043 = vmatprep.subr.mxu0 %v2030_v34 }
 0xbbc   :  { %2044 = vmatpush1.msra.mxu0 %v3611_v4 }
 0xbbd   :  { %2045 = vmatprep.subr.mxu0 %v2029_v52 }
 0xbbe   :  { %2046 = vmatpush1.msra.mxu0 %v3617_v29 }
 0xbbf   :  { %2047 = vmatprep.subr.mxu0 %v2028_v5 }
 0xbc0   :  { %2048 = vmatpush1.msra.mxu0 %v3624_v47 }
 0xbc1   :  { %2049 = vmatprep.subr.mxu0 %v2027_v55 }
 0xbc2   :  { %2050 = vmatpush1.msra.mxu0 %v3630_v19 }
 0xbc3   :  { %2051 = vmatprep.subr.mxu0 %v2026_v18 }
 0xbc4   :  { %2052 = vmatpush1.msra.mxu0 %v3635_v9 }
 0xbc5   :  { %2053 = vmatprep.subr.mxu0 %v2025_v60 }
 0xbc6   :  { %2054 = vmatpush1.msra.mxu0 %v3641_v28 }
 0xbc7   :  { %2055 = vmatprep.subr.mxu0 %v2024_v1 }
 0xbc8   :  { %2056 = vmatpush1.msra.mxu0 %v3648_v26 }
 0xbc9   :  { %2057 = vmatprep.subr.mxu0 %v2023_v7  ;;  %v2172_v7 = vld [vmem:[%s3722_s2] sm:$0xf] }
 0xbca   :  { %2058 = vmatpush1.msra.mxu0 %v2005_v22 }
 0xbcb   :  { %2059 = vmatprep.subr.mxu0 %v2022_v63 }
 0xbcc   :  { %2060 = vmatpush1.msra.mxu0 %v3658_v24 }
 0xbcd   :  { %2061 = vmatprep.subr.mxu0 %v2021_v38 }
 0xbce   :  { %2062 = vmatpush1.msra.mxu0 %v2003_v2 }
 0xbcf   :  { %2063 = vmatprep.subr.mxu0 %v2020_v15 }
 0xbd0   :  { %2064 = vmatpush1.msra.mxu0 %v3668_v3 }
 0xbd1   :  { %2065 = vmatprep.subr.mxu0 %v2019_v36 }
 0xbd2   :  { %2066 = vmatpush1.msra.mxu0 %v3672_v12 }
 0xbd3   :  { %2100 = vmatmul.mubr.f32.vlgmr.msra.gmra.mxu0 %v2809_v49  ;;  %v2018_v49 = vld [vmem:[%s3720_s3 + $0xd] sm:$0x1] }
 0xc93   :  { %v2101_v40 = vpop.f32.mrf.mxu0 }
 0xc94   :  { %v2106_v35 = vmul.f32 0.0078125, %v2101_v40 }
 0xc95   :  { %v2103_v45 = vpop.f32.mrf.mxu0 }
 0xc96   :  { %v2108_v20 = vmul.f32 %v2106_v35, %v2106_v35  ;;  %v2107_v14 = vmul.f32 0.0078125, %v2103_v45 }
 0xc98   :  { %v2109_v43 = vsub.f32 %v2107_v14, %v2108_v20 }
 0xc9a   :  { %v2110_v16 = vmax.f32 %v2109_v43, 0.0 }
 0xc9c   :  { %v2111_v13 = vadd.f32 1e-05, %v2110_v16 }
 0xc9e   :  { %2798 = vrsqrt.f32 %v2111_v13 }
 0xcab   :  { %v2799_v46 = vpop.eup %2798 }
 0xcac   :  { %v2113_v50 = vmul.f32 %v2799_v46, %v2017_v44 }
 0xcae   :  { %v2114_v51 = vmul.f32 %v2113_v50, %v2106_v35  ;;  %v2119_v21 = vrot.slane %v2113_v50, %v3025_v6 }
 0xcb0   :  { %v2115_v8 = vsub.f32 %v2018_v49, %v2114_v51  ;;  %v2134_v62 = vmul.f32 %v2119_v21, %v3594_v48  ;;  %v2135_v56 = vmul.f32 %v2119_v21, %v3597_v23  ;;  %v2132_v58 = vmul.f32 %v2119_v21, %v3606_v59 }
 0xcb1   :  { %v2133_v39 = vmul.f32 %v2119_v21, %v3601_v25  ;;  %v2130_v37 = vmul.f32 %v2119_v21, %v3617_v29  ;;  %v2131_v27 = vmul.f32 %v2119_v21, %v3611_v4  ;;  %v2128_v30 = vmul.f32 %v2119_v21, %v3630_v19 }
 0xcb2   :  { %v2139_v41 = vrot.slane %v2115_v8, %v3025_v6  ;;  %v2129_v11 = vmul.f32 %v2119_v21, %v3624_v47  ;;  %v2126_v31 = vmul.f32 %v2119_v21, %v3641_v28  ;;  %v2127_v48 = vmul.f32 %v2119_v21, %v3635_v9 }
 0xcb3   :  { %v2124_v33 = vmul.f32 %v2119_v21, %v2005_v22  ;;  %v2125_v23 = vmul.f32 %v2119_v21, %v3648_v26  ;;  %v2122_v59 = vmul.f32 %v2119_v21, %v2003_v2  ;;  %v2123_v9 = vmul.f32 %v2119_v21, %v3658_v24 }
 0xcb4   :  { %v2154_v42 = vadd.f32 %v2139_v41, %v2134_v62  ;;  %v2155_v25 = vadd.f32 %v2139_v41, %v2135_v56  ;;  %v2152_v34 = vadd.f32 %v2139_v41, %v2132_v58  ;;  %v2153_v29 = vadd.f32 %v2139_v41, %v2133_v39 }
 0xcb5   :  { %v2150_v32 = vadd.f32 %v2139_v41, %v2130_v37  ;;  %v2151_v4 = vadd.f32 %v2139_v41, %v2131_v27  ;;  %v2148_v52 = vadd.f32 %v2139_v41, %v2128_v30  ;;  %v2149_v6 = vadd.f32 %v2139_v41, %v2129_v11 }
 0xcb6   :  { %2170 = vst [vmem:[#allocation2 + $0x70] sm:$0xff] %v2154_v42  ;;  %2171 = vst [vmem:[#allocation2 + $0x78] sm:$0xff] %v2155_v25  ;;  %v2196_v19 = vpack.c.bf16 %v2155_v25, %v2154_v42  ;;  %v2146_v47 = vadd.f32 %v2139_v41, %v2126_v31  ;;  %v2147_v53 = vadd.f32 %v2139_v41, %v2127_v48 }
 0xcb7   :  { %2168 = vst [vmem:[#allocation2 + $0x60] sm:$0xff] %v2152_v34  ;;  %2169 = vst [vmem:[#allocation2 + $0x68] sm:$0xff] %v2153_v29  ;;  %v2144_v5 = vadd.f32 %v2139_v41, %v2124_v33  ;;  %v2145_v28 = vadd.f32 %v2139_v41, %v2125_v23  ;;  %v2142_v54 = vadd.f32 %v2139_v41, %v2122_v59 }
 0xcb8   :  { %2166 = vst [vmem:[#allocation2 + $0x50] sm:$0xff] %v2150_v32  ;;  %2167 = vst [vmem:[#allocation2 + $0x58] sm:$0xff] %v2151_v4  ;;  %2728 = vmatpush3.bf16.msra.mxu1 %v2196_v19  ;;  %v2143_v55 = vadd.f32 %v2139_v41, %v2123_v9  ;;  %v2120_v57 = vmul.f32 %v2119_v21, %v3672_v12  ;;  %v2121_v26 = vmul.f32 %v2119_v21, %v3668_v3 }
 0xcb9   :  { %2164 = vst [vmem:[#allocation2 + $0x40] sm:$0xff] %v2148_v52  ;;  %2165 = vst [vmem:[#allocation2 + $0x48] sm:$0xff] %v2149_v6  ;;  %2729 = vmatprep.subr.bf16.mxu1 %v2808_v0  ;;  %v2195_v18 = vpack.c.bf16 %v2153_v29, %v2152_v34  ;;  %v2194_v60 = vpack.c.bf16 %v2151_v4, %v2150_v32  ;;  %v2193_v24 = vpack.c.bf16 %v2149_v6, %v2148_v52 }
 0xcba   :  { %2162 = vst [vmem:[#allocation2 + $0x30] sm:$0xff] %v2146_v47  ;;  %2163 = vst [vmem:[#allocation2 + $0x38] sm:$0xff] %v2147_v53  ;;  %v2140_v17 = vadd.f32 %v2139_v41, %v2120_v57  ;;  %v2141_v22 = vadd.f32 %v2139_v41, %v2121_v26  ;;  %v2192_v61 = vpack.c.bf16 %v2147_v53, %v2146_v47 }
 0xcbb   :  { %2160 = vst [vmem:[#allocation2 + $0x20] sm:$0xff] %v2144_v5  ;;  %2161 = vst [vmem:[#allocation2 + $0x28] sm:$0xff] %v2145_v28  ;;  %v2191_v1 = vpack.c.bf16 %v2145_v28, %v2144_v5  ;;  %v2190_v2 = vpack.c.bf16 %v2143_v55, %v2142_v54 }
 0xcbc   :  { %2158 = vst [vmem:[#allocation2 + $0x10] sm:$0xff] %v2142_v54  ;;  %2159 = vst [vmem:[#allocation2 + $0x18] sm:$0xff] %v2143_v55  ;;  %2730 = vmatpush3.bf16.msra.mxu1 %v2195_v18  ;;  %v2189_v10 = vpack.c.bf16 %v2141_v22, %v2140_v17 }
 0xcbd   :  { %2156 = vst [vmem:[#allocation2] sm:$0xff] %v2140_v17  ;;  %2731 = vmatprep.subr.bf16.mxu1 %v2808_v0  ;;  %2157 = vst [vmem:[#allocation2 + $0x8] sm:$0xff] %v2141_v22 }
 0xcc0   :  { %2732 = vmatpush3.bf16.msra.mxu1 %v2194_v60 }
 0xcc1   :  { %2733 = vmatprep.subr.bf16.mxu1 %v2808_v0 }
 0xcc4   :  { %2734 = vmatpush3.bf16.msra.mxu1 %v2193_v24 }
 0xcc5   :  { %2735 = vmatprep.subr.bf16.mxu1 %v2808_v0 }
 0xcc8   :  { %2736 = vmatpush3.bf16.msra.mxu1 %v2192_v61 }
 0xcc9   :  { %2737 = vmatprep.subr.bf16.mxu1 %v2808_v0 }
 0xccc   :  { %2738 = vmatpush3.bf16.msra.mxu1 %v2191_v1 }
 0xccd   :  { %2739 = vmatprep.subr.bf16.mxu1 %v2808_v0 }
 0xcd0   :  { %2740 = vmatpush3.bf16.msra.mxu1 %v2190_v2 }
 0xcd1   :  { %2741 = vmatprep.subr.bf16.mxu1 %v2808_v0 }
 0xcd4   :  { %2742 = vmatpush3.bf16.msra.mxu1 %v2189_v10 }
 0xcd7   :  { %2744 = vmatmul.mubr.bf16.vlgmr.msra.gmra.mxu1 %v2172_v7 }
 0xd97   :  { %v2231_v3 = vpop.f32.mrf.mxu1 }
 0xd98   :  { %2237 = vst [vmem:[%s3723_s5] sm:$0xff] %v2231_v3 }
 0xd99   :  { %v2745_v63 = vpop.f32.mrf.mxu1 }
 0xd9b   :  { %v2234_v12 = vpop.f32.mrf.mxu1 }
 0xd9d   :  { %v2746_v38 = vpop.f32.mrf.mxu1 }

</bundles_post_ra>
